<compile_context>
chip_gen: v7x
topology: tpu7x:2x2x1
jax: 0.10.0
libtpu: 0.0.40
codegen_flags: <defaults>
</compile_context>

<pallas_src>
import functools

import jax
import jax.numpy as jnp
from jax import lax
from jax.experimental import pallas as pl
from jax.experimental.pallas import tpu as pltpu

ALPHA = 0.4
STEPS = 4


def _round_up(x, m):
    return ((x + m - 1) // m) * m


def _pick_tile(n, candidates):
    for c in candidates:
        if n % c == 0:
            return c
    return n


# ---------------------------------------------------------------------------
# Kernel 1: densify + symmetric normalization (row-sorted, scalar-prefetched).
#   For row-block i only edge tiles [base[i], base[i]+ntiles[i]) are processed.
#   acc(TR,TC) += masked_attr(TR,TE) @ col_onehot(TE,TC)          [MXU]
#   epilogue:   A = dinv_row(TR,1) * acc * dinv_col(1,TC)
# ---------------------------------------------------------------------------
def _densify_kernel(base_ref, ntiles_ref, rows_ref, attr_ref, cols_ref,
                    drow_ref, dcol_ref, a_ref, acc_ref):
    i = pl.program_id(0)
    j = pl.program_id(1)
    k = pl.program_id(2)

    @pl.when(k == 0)
    def _():
        acc_ref[...] = jnp.zeros_like(acc_ref)

    @pl.when(k < ntiles_ref[i])
    def _():
        rows = rows_ref[...]                         # (1, TE)  int32, lane-major
        attr = attr_ref[...]                         # (1, TE)  f32
        cols = cols_ref[...]                         # (TE, 1)  int32, sublane-major
        tr, tc = acc_ref.shape
        te = rows.shape[1]
        # shift the small edge vectors, not the big iotas (VALU saving)
        rows_local = rows - i * tr                   # (1, TE)
        cols_local = cols - j * tc                   # (TE, 1)
        row_iota = lax.broadcasted_iota(jnp.int32, (tr, te), 0)
        col_iota = lax.broadcasted_iota(jnp.int32, (te, tc), 1)
        lhs = jnp.where(row_iota == rows_local, attr, 0.0)    # (TR, TE) masked attrs
        rhs = (cols_local == col_iota).astype(jnp.float32)    # (TE, TC) col one-hot
        acc_ref[...] += jnp.dot(lhs, rhs, preferred_element_type=jnp.float32)

    @pl.when(k == pl.num_programs(2) - 1)
    def _():
        a_ref[...] = drow_ref[...] * acc_ref[...] * dcol_ref[...]


# ---------------------------------------------------------------------------
# Kernel 2: B = theta * (A@A + A + I)   (Horner step, fused epilogue)
# ---------------------------------------------------------------------------
def _matmul_horner_kernel(a_ref, b_ref, a_ij_ref, o_ref, acc_ref, *, theta):
    i = pl.program_id(0)
    j = pl.program_id(1)
    k = pl.program_id(2)

    @pl.when(k == 0)
    def _():
        acc_ref[...] = jnp.zeros_like(acc_ref)

    acc_ref[...] += jnp.dot(a_ref[...], b_ref[...], preferred_element_type=jnp.float32)

    @pl.when(k == pl.num_programs(2) - 1)
    def _():
        tm, tn = acc_ref.shape
        r = lax.broadcasted_iota(jnp.int32, (tm, tn), 0) + i * tm
        c = lax.broadcasted_iota(jnp.int32, (tm, tn), 1) + j * tn
        eye = (r == c).astype(jnp.float32)
        o_ref[...] = (theta * (acc_ref[...] + a_ij_ref[...] + eye)).astype(o_ref.dtype)


# ---------------------------------------------------------------------------
# Kernel 3: S = A@B + alpha*I     (A@B == theta*(A + A^2 + A^3))
# ---------------------------------------------------------------------------
def _matmul_final_kernel(a_ref, b_ref, o_ref, acc_ref, *, alpha):
    i = pl.program_id(0)
    j = pl.program_id(1)
    k = pl.program_id(2)

    @pl.when(k == 0)
    def _():
        acc_ref[...] = jnp.zeros_like(acc_ref)

    acc_ref[...] += jnp.dot(a_ref[...], b_ref[...], preferred_element_type=jnp.float32)

    @pl.when(k == pl.num_programs(2) - 1)
    def _():
        tm, tn = acc_ref.shape
        r = lax.broadcasted_iota(jnp.int32, (tm, tn), 0) + i * tm
        c = lax.broadcasted_iota(jnp.int32, (tm, tn), 1) + j * tn
        eye = (r == c).astype(jnp.float32)
        o_ref[...] = (acc_ref[...] + alpha * eye).astype(o_ref.dtype)


# ---------------------------------------------------------------------------
# Wrapper
# ---------------------------------------------------------------------------
def ppr_forward(x, edge_index, edge_attr, *, tile_e=2048, tile_n=128,
                alpha=ALPHA, steps=STEPS):
    assert steps == 4, "kernel is specialized to steps=4: theta*(A+A^2+A^3)+alpha*I"
    N = x.shape[0]
    E = edge_attr.shape[0]

    NP = max(_round_up(N, tile_n), tile_n)
    tile_e = min(tile_e, max(512, _round_up(E, 512)))   # don't over-pad tiny graphs
    EP = max(_round_up(E, tile_e), tile_e)
    n_nt = NP // tile_n
    n_et = EP // tile_e

    rows = edge_index[0].astype(jnp.int32)
    cols = edge_index[1].astype(jnp.int32)

    # ---- deg^{-1/2}: plain O(E) scatter-add (per perf review, no kernel) -----
    deg = jnp.zeros((NP,), jnp.float32).at[rows].add(1.0)
    dinv = jnp.where(deg > 0.0, lax.rsqrt(deg), 0.0)     # isolated nodes -> 0 (no NaN)
    dinv_row = dinv.reshape(NP, 1)
    dinv_col = dinv.reshape(1, NP)

    # ---- pad edges with out-of-range sentinel, then sort by row --------------
    rows_p = jnp.full((EP,), NP, jnp.int32).at[:E].set(rows)
    cols_p = jnp.full((EP,), NP, jnp.int32).at[:E].set(cols)
    attr_p = jnp.zeros((EP,), jnp.float32).at[:E].set(edge_attr.astype(jnp.float32))
    order = jnp.argsort(rows_p)                          # sentinels sort last
    rows_p = rows_p[order]
    cols_p = cols_p[order]
    attr_p = attr_p[order]

    rows_lane = rows_p.reshape(1, EP)      # lane-dense edge ids (row masks)
    attr_lane = attr_p.reshape(1, EP)      # lane-dense edge weights
    cols_sub = cols_p.reshape(EP, 1)       # sublane layout (col one-hots, no transpose)

    # ---- per-row-block edge-tile table (scalar prefetch) ---------------------
    boundaries = jnp.arange(n_nt + 1, dtype=jnp.int32) * tile_n
    edge_starts = jnp.searchsorted(rows_p, boundaries).astype(jnp.int32)
    start_e = edge_starts[:-1]
    end_e = edge_starts[1:]
    tile_base = (start_e // tile_e).astype(jnp.int32)
    tile_end = jnp.where(end_e > start_e, (end_e + tile_e - 1) // tile_e,
                         start_e // tile_e)
    ntiles = (tile_end.astype(jnp.int32) - tile_base).astype(jnp.int32)
    try:
        kmax = max(int(jnp.max(ntiles)), 1)
    except (jax.errors.ConcretizationTypeError, TypeError):
        kmax = n_et   # under jit: fall back to a full edge sweep (still correct)

    def _edge_lane_map(i, j, k, base_ref, nt_ref):
        return (0, jnp.minimum(base_ref[i] + k, n_et - 1))

    def _edge_sub_map(i, j, k, base_ref, nt_ref):
        return (jnp.minimum(base_ref[i] + k, n_et - 1), 0)

    # ---- densify + symmetric normalize: A (NP, NP) ---------------------------
    adj = pl.pallas_call(
        _densify_kernel,
        out_shape=jax.ShapeDtypeStruct((NP, NP), jnp.float32),
        grid_spec=pltpu.PrefetchScalarGridSpec(
            num_scalar_prefetch=2,
            grid=(n_nt, n_nt, kmax),
            in_specs=[
                pl.BlockSpec((1, tile_e), _edge_lane_map),                 # rows
                pl.BlockSpec((1, tile_e), _edge_lane_map),                 # attr
                pl.BlockSpec((tile_e, 1), _edge_sub_map),                  # cols
                pl.BlockSpec((tile_n, 1), lambda i, j, k, b, n: (i, 0)),   # dinv rows
                pl.BlockSpec((1, tile_n), lambda i, j, k, b, n: (0, j)),   # dinv cols
            ],
            out_specs=pl.BlockSpec((tile_n, tile_n), lambda i, j, k, b, n: (i, j)),
            scratch_shapes=[pltpu.VMEM((tile_n, tile_n), jnp.float32)]),
        compiler_params=pltpu.CompilerParams(
            dimension_semantics=("parallel", "parallel", "arbitrary")),
    )(tile_base, ntiles, rows_lane, attr_lane, cols_sub, dinv_row, dinv_col)

    # ---- dense MXU passes: tiles decoupled from tile_n, sized for v5e-v7x ----
    tm = _pick_tile(NP, (256, 128))        # 256x256 f32 output blocks when N permits
    tk = _pick_tile(NP, (512, 256, 128))   # 512-wide K blocks
    n_i = NP // tm
    n_k = NP // tk
    theta = alpha * (1.0 - alpha)
    mm_params = pltpu.CompilerParams(
        dimension_semantics=("parallel", "parallel", "arbitrary"))

    # B = theta*(A@A + A + I)
    b_mat = pl.pallas_call(
        functools.partial(_matmul_horner_kernel, theta=theta),
        out_shape=jax.ShapeDtypeStruct((NP, NP), jnp.float32),
        grid_spec=pltpu.PrefetchScalarGridSpec(
            num_scalar_prefetch=0,
            grid=(n_i, n_i, n_k),
            in_specs=[pl.BlockSpec((tm, tk), lambda i, j, k: (i, k)),
                      pl.BlockSpec((tk, tm), lambda i, j, k: (k, j)),
                      pl.BlockSpec((tm, tm), lambda i, j, k: (i, j))],
            out_specs=pl.BlockSpec((tm, tm), lambda i, j, k: (i, j)),
            scratch_shapes=[pltpu.VMEM((tm, tm), jnp.float32)]),
        compiler_params=mm_params,
    )(adj, adj, adj)

    # S = A@B + alpha*I  ==  theta*(A + A^2 + A^3) + alpha*I
    S = pl.pallas_call(
        functools.partial(_matmul_final_kernel, alpha=alpha),
        out_shape=jax.ShapeDtypeStruct((NP, NP), jnp.float32),
        grid_spec=pltpu.PrefetchScalarGridSpec(
            num_scalar_prefetch=0,
            grid=(n_i, n_i, n_k),
            in_specs=[pl.BlockSpec((tm, tk), lambda i, j, k: (i, k)),
                      pl.BlockSpec((tk, tm), lambda i, j, k: (k, j))],
            out_specs=pl.BlockSpec((tm, tm), lambda i, j, k: (i, j)),
            scratch_shapes=[pltpu.VMEM((tm, tm), jnp.float32)]),
        compiler_params=mm_params,
    )(adj, b_mat)

    S = S[:N, :N]

    # TODO(synk): dynamic-nnz sparse COO (res._indices()/_values()) is not
    # expressible with static shapes; return the dense-grid COO (explicit zeros kept).
    rr = jnp.repeat(jnp.arange(N, dtype=jnp.int32), N)
    cc = jnp.tile(jnp.arange(N, dtype=jnp.int32), N)
    indices = jnp.stack([rr, cc], axis=0)       # (2, N*N)
    values = S.reshape(-1)                      # (N*N,)
    return indices, values


if __name__ == "__main__":
    key = jax.random.PRNGKey(0)
    k_src, k_dst, k_attr, k_x = jax.random.split(key, 4)

    N = 100          # nodes
    in_feat = 16
    E_half = 200     # undirected edges -> 400 directed

    src = jax.random.randint(k_src, (E_half,), 0, N, dtype=jnp.int32)
    dst = jax.random.randint(k_dst, (E_half,), 0, N, dtype=jnp.int32)
    # symmetric edge set: every node seen as a column also has row-degree > 0
    rows = jnp.concatenate([src, dst])
    cols = jnp.concatenate([dst, src])
    edge_index = jnp.stack([rows, cols], axis=0)                  # (2, 400)
    w = jax.random.uniform(k_attr, (E_half,), jnp.float32) + 0.1
    edge_attr = jnp.concatenate([w, w])                           # (400,)
    x = jax.random.normal(k_x, (N, in_feat), jnp.float32)

    indices, values = ppr_forward(x, edge_index, edge_attr)
    values = jax.block_until_ready(values)

    # ---- pure-JAX dense reference mirroring the PyTorch module ----
    deg = jnp.zeros((N,), jnp.float32).at[rows].add(1.0)
    dinv = jnp.where(deg > 0, 1.0 / jnp.sqrt(deg), 0.0)
    attr_t = dinv[rows] * edge_attr * dinv[cols]
    A = jnp.zeros((N, N), jnp.float32).at[rows, cols].add(attr_t)
    theta = ALPHA * (1.0 - ALPHA)
    A2 = jnp.dot(A, A, precision=jax.lax.Precision.HIGHEST)
    A3 = jnp.dot(A, A2, precision=jax.lax.Precision.HIGHEST)
    S_ref = theta * (A + A2 + A3) + ALPHA * jnp.eye(N, dtype=jnp.float32)

    S_out = values.reshape(N, N)
    assert indices.shape == (2, N * N)
    err = float(jnp.max(jnp.abs(S_out - S_ref)))
    assert jnp.allclose(S_out, S_ref, rtol=1e-3, atol=1e-4), err

    print("KERNEL_OK")
</pallas_src>

<mosaic_0001>
module attributes {stable_mosaic.version = 11 : i64} {
  func.func @_densify_kernel(%arg0: i32, %arg1: i32, %arg2: i32, %arg3: memref<1xi32, #tpu.memory_space<smem>>, %arg4: memref<1xi32, #tpu.memory_space<smem>>, %arg5: memref<1x512xi32, #tpu.memory_space<vmem>>, %arg6: memref<1x512xf32, #tpu.memory_space<vmem>>, %arg7: memref<512x1xi32, #tpu.memory_space<vmem>>, %arg8: memref<128x1xf32, #tpu.memory_space<vmem>>, %arg9: memref<1x128xf32, #tpu.memory_space<vmem>>, %arg10: memref<128x128xf32, #tpu.memory_space<vmem>>, %arg11: memref<128x128xf32, #tpu.memory_space<vmem>>) attributes {dimension_semantics = [#tpu.dimension_semantics<parallel>, #tpu.dimension_semantics<parallel>, #tpu.dimension_semantics<arbitrary>], iteration_bounds = array<i64: 1, 1, 1>, scalar_prefetch = 2 : i64, scratch_operands = 1 : i64, tpu.core_type = #tpu.core_type<tc>, window_params = [{transform_indices = @transform_0, window_bounds = array<i64: 1, 512>}, {transform_indices = @transform_1, window_bounds = array<i64: 1, 512>}, {transform_indices = @transform_2, window_bounds = array<i64: 512, 1>}, {transform_indices = @transform_3, window_bounds = array<i64: 128, 1>}, {transform_indices = @transform_4, window_bounds = array<i64: 1, 128>}, {transform_indices = @transform_5, window_bounds = array<i64: 128, 128>}]} {
    %c0_i32 = arith.constant 0 : i32
    %0 = arith.cmpi eq, %arg2, %c0_i32 : i32
    %1 = arith.extui %0 : i1 to i32
    %c0_i32_0 = arith.constant 0 : i32
    %2 = arith.cmpi ne, %1, %c0_i32_0 : i32
    scf.if %2 {
      %cst = arith.constant 0.000000e+00 : f32
      %11 = vector.broadcast %cst : f32 to vector<128x128xf32>
      %c0 = arith.constant 0 : index
      %c0_4 = arith.constant 0 : index
      %12 = vector.load %arg11[%c0, %c0_4] : memref<128x128xf32, #tpu.memory_space<vmem>>, vector<128x128xf32>
      tpu.vector_store %arg11[%c0, %c0_4], %11 {strides = array<i32>} : memref<128x128xf32, #tpu.memory_space<vmem>>, vector<128x128xf32>,
    } else {
    }
    %3 = arith.index_cast %arg0 : i32 to index
    %4 = memref.load %arg4[%3] : memref<1xi32, #tpu.memory_space<smem>>
    %5 = arith.cmpi slt, %arg2, %4 : i32
    %6 = arith.extui %5 : i1 to i32
    %c0_i32_1 = arith.constant 0 : i32
    %7 = arith.cmpi ne, %6, %c0_i32_1 : i32
    scf.if %7 {
      %c0 = arith.constant 0 : index
      %c0_4 = arith.constant 0 : index
      %11 = vector.load %arg5[%c0, %c0_4] : memref<1x512xi32, #tpu.memory_space<vmem>>, vector<1x512xi32>
      %c0_5 = arith.constant 0 : index
      %c0_6 = arith.constant 0 : index
      %12 = vector.load %arg6[%c0_5, %c0_6] : memref<1x512xf32, #tpu.memory_space<vmem>>, vector<1x512xf32>
      %c0_7 = arith.constant 0 : index
      %c0_8 = arith.constant 0 : index
      %13 = vector.load %arg7[%c0_7, %c0_8] : memref<512x1xi32, #tpu.memory_space<vmem>>, vector<512x1xi32>
      %c128_i32 = arith.constant 128 : i32
      %14 = arith.muli %arg0, %c128_i32 : i32
      %15 = vector.broadcast %14 : i32 to vector<1x512xi32>
      %16 = arith.subi %11, %15 : vector<1x512xi32>
      %c128_i32_9 = arith.constant 128 : i32
      %17 = arith.muli %arg1, %c128_i32_9 : i32
      %18 = vector.broadcast %17 : i32 to vector<512x1xi32>
      %19 = arith.subi %13, %18 : vector<512x1xi32>
      %20 = tpu.iota {dimensions = array<i32: 0>} : vector<128x512xi32>
      %21 = tpu.iota {dimensions = array<i32: 1>} : vector<512x128xi32>
      %22 = vector.broadcast %16 : vector<1x512xi32> to vector<128x512xi32>
      %23 = arith.cmpi eq, %20, %22 : vector<128x512xi32>
      %cst = arith.constant 0.000000e+00 : f32
      %24 = vector.shape_cast %12 : vector<1x512xf32> to vector<1x512xf32>
      %25 = vector.broadcast %24 : vector<1x512xf32> to vector<128x512xf32>
      %26 = vector.broadcast %cst : f32 to vector<128x512xf32>
      %27 = arith.select %23, %25, %26 : vector<128x512xi1>, vector<128x512xf32>
      %28 = vector.broadcast %19 : vector<512x1xi32> to vector<512x128xi32>
      %29 = arith.cmpi eq, %28, %21 : vector<512x128xi32>
      %30 = arith.extui %29 : vector<512x128xi1> to vector<512x128xi32>
      %31 = arith.sitofp %30 : vector<512x128xi32> to vector<512x128xf32>
      %c0_10 = arith.constant 0 : index
      %c0_11 = arith.constant 0 : index
      %32 = vector.load %arg11[%c0_10, %c0_11] : memref<128x128xf32, #tpu.memory_space<vmem>>, vector<128x128xf32>
      %cst_12 = arith.constant dense<0.000000e+00> : vector<128x128xf32>
      %33 = tpu.matmul %27, %31, %cst_12 {dimension_numbers = #tpu.dot_dimension_numbers<[1], [0], [0], [1], [0, 0, 1, 1], [], []>} : vector<128x512xf32>, vector<512x128xf32>, vector<128x128xf32> -> vector<128x128xf32>
      %34 = arith.addf %32, %33 : vector<128x128xf32>
      %c0_13 = arith.constant 0 : index
      %c0_14 = arith.constant 0 : index
      %35 = vector.load %arg11[%c0_13, %c0_14] : memref<128x128xf32, #tpu.memory_space<vmem>>, vector<128x128xf32>
      tpu.vector_store %arg11[%c0_13, %c0_14], %34 {strides = array<i32>} : memref<128x128xf32, #tpu.memory_space<vmem>>, vector<128x128xf32>,
    } else {
    }
    %c0_i32_2 = arith.constant 0 : i32
    %8 = arith.cmpi eq, %arg2, %c0_i32_2 : i32
    %9 = arith.extui %8 : i1 to i32
    %c0_i32_3 = arith.constant 0 : i32
    %10 = arith.cmpi ne, %9, %c0_i32_3 : i32
    scf.if %10 {
      %c0 = arith.constant 0 : index
      %c0_4 = arith.constant 0 : index
      %11 = vector.load %arg8[%c0, %c0_4] : memref<128x1xf32, #tpu.memory_space<vmem>>, vector<128x1xf32>
      %c0_5 = arith.constant 0 : index
      %c0_6 = arith.constant 0 : index
      %12 = vector.load %arg11[%c0_5, %c0_6] : memref<128x128xf32, #tpu.memory_space<vmem>>, vector<128x128xf32>
      %13 = vector.broadcast %11 : vector<128x1xf32> to vector<128x128xf32>
      %14 = arith.mulf %13, %12 : vector<128x128xf32>
      %c0_7 = arith.constant 0 : index
      %c0_8 = arith.constant 0 : index
      %15 = vector.load %arg9[%c0_7, %c0_8] : memref<1x128xf32, #tpu.memory_space<vmem>>, vector<1x128xf32>
      %16 = vector.broadcast %15 : vector<1x128xf32> to vector<128x128xf32>
      %17 = arith.mulf %14, %16 : vector<128x128xf32>
      %c0_9 = arith.constant 0 : index
      %c0_10 = arith.constant 0 : index
      %18 = vector.load %arg10[%c0_9, %c0_10] : memref<128x128xf32, #tpu.memory_space<vmem>>, vector<128x128xf32>
      tpu.vector_store %arg10[%c0_9, %c0_10], %17 {strides = array<i32>} : memref<128x128xf32, #tpu.memory_space<vmem>>, vector<128x128xf32>,
    } else {
    }
    return
  }
  func.func @transform_0(%arg0: i32, %arg1: i32, %arg2: i32, %arg3: memref<1xi32, #tpu.memory_space<smem>>, %arg4: memref<1xi32, #tpu.memory_space<smem>>) -> (i32, i32) {
    %0 = arith.index_cast %arg0 : i32 to index
    %1 = memref.load %arg3[%0] : memref<1xi32, #tpu.memory_space<smem>>
    %2 = arith.addi %1, %arg2 : i32
    %c0_i32 = arith.constant 0 : i32
    %3 = arith.minsi %2, %c0_i32 : i32
    %c0_i32_0 = arith.constant 0 : i32
    %c0_i32_1 = arith.constant 0 : i32
    return %c0_i32_0, %3 : i32, i32
  }
  func.func @transform_1(%arg0: i32, %arg1: i32, %arg2: i32, %arg3: memref<1xi32, #tpu.memory_space<smem>>, %arg4: memref<1xi32, #tpu.memory_space<smem>>) -> (i32, i32) {
    %0 = arith.index_cast %arg0 : i32 to index
    %1 = memref.load %arg3[%0] : memref<1xi32, #tpu.memory_space<smem>>
    %2 = arith.addi %1, %arg2 : i32
    %c0_i32 = arith.constant 0 : i32
    %3 = arith.minsi %2, %c0_i32 : i32
    %c0_i32_0 = arith.constant 0 : i32
    %c0_i32_1 = arith.constant 0 : i32
    return %c0_i32_0, %3 : i32, i32
  }
  func.func @transform_2(%arg0: i32, %arg1: i32, %arg2: i32, %arg3: memref<1xi32, #tpu.memory_space<smem>>, %arg4: memref<1xi32, #tpu.memory_space<smem>>) -> (i32, i32) {
    %0 = arith.index_cast %arg0 : i32 to index
    %1 = memref.load %arg3[%0] : memref<1xi32, #tpu.memory_space<smem>>
    %2 = arith.addi %1, %arg2 : i32
    %c0_i32 = arith.constant 0 : i32
    %3 = arith.minsi %2, %c0_i32 : i32
    %c0_i32_0 = arith.constant 0 : i32
    %c0_i32_1 = arith.constant 0 : i32
    return %3, %c0_i32_0 : i32, i32
  }
  func.func @transform_3(%arg0: i32, %arg1: i32, %arg2: i32, %arg3: memref<1xi32, #tpu.memory_space<smem>>, %arg4: memref<1xi32, #tpu.memory_space<smem>>) -> (i32, i32) {
    %c0_i32 = arith.constant 0 : i32
    %c0_i32_0 = arith.constant 0 : i32
    return %arg0, %c0_i32 : i32, i32
  }
  func.func @transform_4(%arg0: i32, %arg1: i32, %arg2: i32, %arg3: memref<1xi32, #tpu.memory_space<smem>>, %arg4: memref<1xi32, #tpu.memory_space<smem>>) -> (i32, i32) {
    %c0_i32 = arith.constant 0 : i32
    %c0_i32_0 = arith.constant 0 : i32
    return %c0_i32, %arg1 : i32, i32
  }
  func.func @transform_5(%arg0: i32, %arg1: i32, %arg2: i32, %arg3: memref<1xi32, #tpu.memory_space<smem>>, %arg4: memref<1xi32, #tpu.memory_space<smem>>) -> (i32, i32) {
    %c0_i32 = arith.constant 0 : i32
    return %arg0, %arg1 : i32, i32
  }
}

</mosaic_0001>

<bundles_post_ra>
// kernel: tpu_custom_call.1
= control target key start
LH: loop header
LB: loop body
LE: loop exit
PB: predicated region body
PF: predicated region fallthrough
CT: control target
= control target key end

     0   :  { %14 = vsyncpa [#allocation7], 0  ;;  %v1852_v0 = vmov 0.0   ;;  %s2625_s0 = inlined_call_operand.<no memory space> [shape: s32[1], index: 0, kind: input, shape index: {}]   ;;  %s2626_s1 = inlined_call_operand.<no memory space> [shape: s32[1], index: 1, kind: input, shape index: {}]   ;;  %s2627_s2 = inlined_call_operand.vmem [shape: s32[1,512], index: 2, kind: input, shape index: {}]   ;;  %s2628_s3 = inlined_call_operand.vmem [shape: f32[1,512], index: 3, kind: input, shape index: {}]   ;;  %s2629_s4 = inlined_call_operand.vmem [shape: s32[512,1], index: 4, kind: input, shape index: {}]   ;;  %s2630_s5 = inlined_call_operand.vmem [shape: f32[128,1], index: 5, kind: input, shape index: {}]   ;;  %s2631_s6 = inlined_call_operand.vmem [shape: f32[1,128], index: 6, kind: input, shape index: {}]   ;;  %s2632_s7 = inlined_call_operand.hbm [shape: f32[128,128], index: 7, kind: output, shape index: {}]  }
   0x1   :  { %p92_p0 = scmp.lt.s32.totalorder %s2625_s0, 0  ;;  %134 = vst [vmem:[#allocation2] sm:$0xff] %v1852_v0  ;;  %135 = vst [vmem:[#allocation2 + $0x8] sm:$0xff] %v1852_v0  ;;  %p1399_p3 = scmp.le.s32.totalorder %s2626_s1, 0 }
   0x2   :  { %136 = vst [vmem:[#allocation2 + $0x10] sm:$0xff] %v1852_v0  ;;  %137 = vst [vmem:[#allocation2 + $0x18] sm:$0xff] %v1852_v0  ;;  %v1853_v3 = vmov (!%p1399_p3), 0  }
   0x3   :  { %138 = vst [vmem:[#allocation2 + $0x20] sm:$0xff] %v1852_v0  ;;  %139 = vst [vmem:[#allocation2 + $0x28] sm:$0xff] %v1852_v0  ;;  %s2689_s0 = smov (!%p92_p0, %s2625_s0), 0  ;;  %1825 = vset.pattern.permute.xlu1 (!%p1399_p3), %v1853_v3  ;;  %1824 = vset.pattern.permute.xlu0 (!%p1399_p3), %v1853_v3 }
   0x4   :  { %140 = vst [vmem:[#allocation2 + $0x30] sm:$0xff] %v1852_v0  ;;  %141 = vst [vmem:[#allocation2 + $0x38] sm:$0xff] %v1852_v0  ;;  %s1394_s30 = sshll.u32 %s2689_s0, 2  ;;  %s1396_s8 = sshll.u32 %s2689_s0, 6 }
   0x5   :  { %142 = vst [vmem:[#allocation2 + $0x40] sm:$0xff] %v1852_v0  ;;  %143 = vst [vmem:[#allocation2 + $0x48] sm:$0xff] %v1852_v0  ;;  %p95_p1 = scmp.lt.s32.totalorder %s1394_s30, 3  ;;  %p121_p2 = scmp.lt.s32.totalorder %s1396_s8, 63 }
   0x6   :  { %144 = vst [vmem:[#allocation2 + $0x50] sm:$0xff] %v1852_v0  ;;  %145 = vst [vmem:[#allocation2 + $0x58] sm:$0xff] %v1852_v0  ;;  %154 = sbr.rel (%p1399_p3) target bundleno = 550 (0x226), region = 29 }
   0x7   :  { %146 = vst [vmem:[#allocation2 + $0x60] sm:$0xff] %v1852_v0  ;;  %147 = vst [vmem:[#allocation2 + $0x68] sm:$0xff] %v1852_v0  ;;  %s2691_s30 = smov (!%p95_p1, %s1394_s30), 3  ;;  %s2693_s8 = smov (!%p121_p2, %s1396_s8), 63 }
   0x8   :  { %148 = vst [vmem:[#allocation2 + $0x70] sm:$0xff] %v1852_v0  ;;  %149 = vst [vmem:[#allocation2 + $0x78] sm:$0xff] %v1852_v0  ;;  %s97_s11 = scalar_lea.vmem %s2627_s2, %s2691_s30  ;;  %s110_s14 = scalar_lea.vmem %s2628_s3, %s2691_s30  ;;  %v290_v0 = vlaneseq (!%p1399_p3) }
   0x9   :  { %s1397_s15 = sshll.u32 %s2693_s8, 3 }
   0xa   :  { %s1922_s0 = scalar_lea.vmem %s2629_s4, %s1397_s15  ;;  %v1991_v3 = vshrl.u32 (!%p1399_p3), %v290_v0, 7 }
   0xb   :  { %v205_v1 = vld [vmem:[%s1922_s0 + $0x180] sm:$0xff] (!%p1399_p3)  ;;  %v206_v4 = vld [vmem:[%s1922_s0 + $0x188] sm:$0xff] (!%p1399_p3)  ;;  %v176_v10 = vld [vmem:[%s1922_s0 + $0x98] sm:$0xff] (!%p1399_p3) }
   0xc   :  { %v173_v2 = vld [vmem:[%s1922_s0 + $0x80] sm:$0xff] (!%p1399_p3)  ;;  %619 = vperm.xlu1 (!%p1399_p3), %1825, %v205_v1   ;;  %v174_v5 = vld [vmem:[%s1922_s0 + $0x88] sm:$0xff] (!%p1399_p3)  ;;  %v175_v11 = vld [vmem:[%s1922_s0 + $0x90] sm:$0xff] (!%p1399_p3) }
   0xd   :  { %523 = vperm.xlu0 %1824, %v173_v2   ;;  %v158_v6 = vld [vmem:[%s1922_s0 + $0x8] sm:$0xff]  ;;  %v157_v7 = vld [vmem:[%s1922_s0] sm:$0xff]  ;;  %v208_v12 = vld [vmem:[%s1922_s0 + $0x198] sm:$0xff] }
   0xe   :  { %v190_v8 = vld [vmem:[%s1922_s0 + $0x108] sm:$0xff]  ;;  %v189_v9 = vld [vmem:[%s1922_s0 + $0x100] sm:$0xff]  ;;  %v207_v13 = vld [vmem:[%s1922_s0 + $0x190] sm:$0xff] }
   0xf   :  { %v160_v14 = vld [vmem:[%s1922_s0 + $0x18] sm:$0xff]  ;;  %v159_v15 = vld [vmem:[%s1922_s0 + $0x10] sm:$0xff]  ;;  %v178_v18 = vld [vmem:[%s1922_s0 + $0xa8] sm:$0xff] }
  0x10   :  { %622 = vperm.xlu1 %1825, %v206_v4   ;;  %v192_v16 = vld [vmem:[%s1922_s0 + $0x118] sm:$0xff]  ;;  %v191_v17 = vld [vmem:[%s1922_s0 + $0x110] sm:$0xff]  ;;  %v177_v19 = vld [vmem:[%s1922_s0 + $0xa0] sm:$0xff]  ;;  %v315_v4 = vsub.s32 1, %v1991_v3 }
  0x11   :  { %526 = vperm.xlu0 %1824, %v174_v5   ;;  %v210_v20 = vld [vmem:[%s1922_s0 + $0x1a8] sm:$0xff]  ;;  %v209_v21 = vld [vmem:[%s1922_s0 + $0x1a0] sm:$0xff]  ;;  %v180_v26 = vld [vmem:[%s1922_s0 + $0xb8] sm:$0xff] }
  0x12   :  { %v162_v22 = vld [vmem:[%s1922_s0 + $0x28] sm:$0xff]  ;;  %v161_v23 = vld [vmem:[%s1922_s0 + $0x20] sm:$0xff]  ;;  %v179_v27 = vld [vmem:[%s1922_s0 + $0xb0] sm:$0xff] }
  0x13   :  { %v194_v24 = vld [vmem:[%s1922_s0 + $0x128] sm:$0xff]  ;;  %v193_v25 = vld [vmem:[%s1922_s0 + $0x120] sm:$0xff]  ;;  %v212_v28 = vld [vmem:[%s1922_s0 + $0x1b8] sm:$0xff] }
  0x14   :  { %478 = vperm.xlu1 %1825, %v158_v6   ;;  %v211_v29 = vld [vmem:[%s1922_s0 + $0x1b0] sm:$0xff]  ;;  %v164_v30 = vld [vmem:[%s1922_s0 + $0x38] sm:$0xff]  ;;  %v182_v34 = vld [vmem:[%s1922_s0 + $0xc8] sm:$0xff]  ;;  %v311_v6 = vsub.s32 0, %v1991_v3 }
  0x15   :  { %475 = vperm.xlu0 %1824, %v157_v7   ;;  %v163_v31 = vld [vmem:[%s1922_s0 + $0x30] sm:$0xff]  ;;  %v196_v32 = vld [vmem:[%s1922_s0 + $0x138] sm:$0xff]  ;;  %v181_v35 = vld [vmem:[%s1922_s0 + $0xc0] sm:$0xff]  ;;  %v323_v7 = vsub.s32 3, %v1991_v3 }
  0x16   :  { %v195_v33 = vld [vmem:[%s1922_s0 + $0x130] sm:$0xff]  ;;  %v214_v36 = vld [vmem:[%s1922_s0 + $0x1c8] sm:$0xff]  ;;  %v213_v37 = vld [vmem:[%s1922_s0 + $0x1c0] sm:$0xff] }
  0x17   :  { %v166_v38 = vld [vmem:[%s1922_s0 + $0x48] sm:$0xff]  ;;  %v165_v39 = vld [vmem:[%s1922_s0 + $0x40] sm:$0xff]  ;;  %v184_v42 = vld [vmem:[%s1922_s0 + $0xd8] sm:$0xff] }
  0x18   :  { %574 = vperm.xlu1 %1825, %v190_v8   ;;  %v198_v40 = vld [vmem:[%s1922_s0 + $0x148] sm:$0xff]  ;;  %v197_v41 = vld [vmem:[%s1922_s0 + $0x140] sm:$0xff]  ;;  %v183_v43 = vld [vmem:[%s1922_s0 + $0xd0] sm:$0xff] }
  0x19   :  { %571 = vperm.xlu0 %1824, %v189_v9   ;;  %v216_v44 = vld [vmem:[%s1922_s0 + $0x1d8] sm:$0xff]  ;;  %v215_v45 = vld [vmem:[%s1922_s0 + $0x1d0] sm:$0xff]  ;;  %v186_v50 = vld [vmem:[%s1922_s0 + $0xe8] sm:$0xff] }
  0x1a   :  { %v168_v46 = vld [vmem:[%s1922_s0 + $0x58] sm:$0xff]  ;;  %v167_v47 = vld [vmem:[%s1922_s0 + $0x50] sm:$0xff]  ;;  %v185_v51 = vld [vmem:[%s1922_s0 + $0xe0] sm:$0xff] }
  0x1b   :  { %v200_v48 = vld [vmem:[%s1922_s0 + $0x158] sm:$0xff]  ;;  %v199_v49 = vld [vmem:[%s1922_s0 + $0x150] sm:$0xff]  ;;  %v218_v52 = vld [vmem:[%s1922_s0 + $0x1e8] sm:$0xff] }
  0x1c   :  { %532 = vperm.xlu1 %1825, %v176_v10   ;;  %v217_v53 = vld [vmem:[%s1922_s0 + $0x1e0] sm:$0xff]  ;;  %v170_v54 = vld [vmem:[%s1922_s0 + $0x68] sm:$0xff]  ;;  %v188_v58 = vld [vmem:[%s1922_s0 + $0xf8] sm:$0xff]  ;;  %v319_v10 = vsub.s32 2, %v1991_v3 }
  0x1d   :  { %529 = vperm.xlu0 %1824, %v175_v11   ;;  %v169_v55 = vld [vmem:[%s1922_s0 + $0x60] sm:$0xff]  ;;  %v202_v56 = vld [vmem:[%s1922_s0 + $0x168] sm:$0xff]  ;;  %v187_v59 = vld [vmem:[%s1922_s0 + $0xf0] sm:$0xff] }
  0x1e   :  { %v201_v57 = vld [vmem:[%s1922_s0 + $0x160] sm:$0xff]  ;;  %v220_v60 = vld [vmem:[%s1922_s0 + $0x1f8] sm:$0xff]  ;;  %v219_v61 = vld [vmem:[%s1922_s0 + $0x1f0] sm:$0xff] }
  0x1f   :  { %v172_v62 = vld [vmem:[%s1922_s0 + $0x78] sm:$0xff]  ;;  %v171_v63 = vld [vmem:[%s1922_s0 + $0x70] sm:$0xff]  ;;  %v155_v5 = vld [vmem:[%s97_s11] sm:$0xf] }
  0x20   :  { %628 = vperm.xlu1 %1825, %v208_v12   ;;  %v204_v1 = vld [vmem:[%s1922_s0 + $0x178] sm:$0xff]  ;;  %v203_v2 = vld [vmem:[%s1922_s0 + $0x170] sm:$0xff]  ;;  %v156_v8 = vld [vmem:[%s110_s14] sm:$0xf]  ;;  %v2006_v9 = vrot.slane %v155_v5, %v315_v4  ;;  %v2011_v12 = vrot.slane %v155_v5, %v311_v6 }
  0x21   :  { %625 = vperm.xlu0 %1824, %v207_v13   ;;  %v2009_v11 = vrot.slane %v156_v8, %v315_v4  ;;  %v2013_v13 = vrot.slane %v156_v8, %v311_v6 }
  0x22   :  { %vm326_vm0 = vcmp.eq.s32.totalorder %v1991_v3, %v2006_v9  ;;  %vm325_vm1 = vcmp.eq.s32.totalorder %v1991_v3, %v2011_v12 }
  0x23   :  { %1496 = vmatprep.mubr.msk.f32.mxu0 %vm326_vm0, %v2009_v11 }
  0x24   :  { %484 = vperm.xlu1 %1825, %v160_v14   ;;  %v2015_v14 = vrot.slane %v155_v5, %v323_v7 }
  0x25   :  { %481 = vperm.xlu0 %1824, %v159_v15  }
  0x26   :  { %vm328_vm2 = vcmp.eq.s32.totalorder %v1991_v3, %v2015_v14 }
  0x28   :  { %580 = vperm.xlu1 %1825, %v192_v16  }
  0x29   :  { %577 = vperm.xlu0 %1824, %v191_v17   ;;  %v2019_v17 = vrot.slane %v156_v8, %v323_v7 }
  0x2b   :  { %1560 = vmatprep.mubr.msk.f32.mxu1 %vm328_vm2, %v2019_v17 }
  0x2c   :  { %538 = vperm.xlu1 %1825, %v178_v18   ;;  %v2021_v18 = vrot.slane %v155_v5, %v319_v10 }
  0x2d   :  { %535 = vperm.xlu0 %1824, %v177_v19   ;;  %v2023_v19 = vrot.slane %v156_v8, %v319_v10 }
  0x2e   :  { %vm327_vm3 = vcmp.eq.s32.totalorder %v1991_v3, %v2021_v18 }
  0x30   :  { %634 = vperm.xlu1 %1825, %v210_v20   ;;  %v2025_v20 = vand.u32 127, %v290_v0  ;;  %v2234_v0 = vadd.s32 120, %v1991_v3 }
  0x31   :  { %631 = vperm.xlu0 %1824, %v209_v21   ;;  %v2036_v21 = vadd.s32 8, %v1991_v3 }
  0x33   :  { %vm330_vm4 = vcmp.eq.s32.totalorder %v2036_v21, %v2006_v9  ;;  %vm329_vm5 = vcmp.eq.s32.totalorder %v2036_v21, %v2011_v12  ;;  %vm332_vm6 = vcmp.eq.s32.totalorder %v2036_v21, %v2015_v14  ;;  %vm331_vm7 = vcmp.eq.s32.totalorder %v2036_v21, %v2021_v18 }
  0x34   :  { %490 = vperm.xlu1 %1825, %v162_v22  }
  0x35   :  { %487 = vperm.xlu0 %1824, %v161_v23  }
  0x38   :  { %586 = vperm.xlu1 %1825, %v194_v24   ;;  %v2051_v24 = vadd.s32 16, %v1991_v3 }
  0x39   :  { %583 = vperm.xlu0 %1824, %v193_v25   ;;  %v1854_v25 = vmov 1.0|1.0  }
  0x3a   :  { %vm334_vm14 = vcmp.eq.s32.totalorder %v2051_v24, %v2006_v9 }
  0x3c   :  { %544 = vperm.xlu1 %1825, %v180_v26  }
  0x3d   :  { %541 = vperm.xlu0 %1824, %v179_v27  }
  0x40   :  { %640 = vperm.xlu1 %1825, %v212_v28   ;;  %v2066_v28 = vadd.s32 24, %v1991_v3 }
  0x41   :  { %637 = vperm.xlu0 %1824, %v211_v29  }
  0x44   :  { %496 = vperm.xlu1 %1825, %v164_v30  }
  0x45   :  { %493 = vperm.xlu0 %1824, %v163_v31   ;;  %v2080_v31 = vadd.s32 32, %v1991_v3 }
  0x48   :  { %592 = vperm.xlu1 %1825, %v196_v32  }
  0x49   :  { %589 = vperm.xlu0 %1824, %v195_v33  }
  0x4c   :  { %550 = vperm.xlu1 %1825, %v182_v34   ;;  %v2094_v34 = vadd.s32 40, %v1991_v3 }
  0x4d   :  { %547 = vperm.xlu0 %1824, %v181_v35  }
  0x50   :  { %646 = vperm.xlu1 %1825, %v214_v36  }
  0x51   :  { %643 = vperm.xlu0 %1824, %v213_v37   ;;  %v2108_v37 = vadd.s32 48, %v1991_v3 }
  0x54   :  { %502 = vperm.xlu1 %1825, %v166_v38  }
  0x55   :  { %499 = vperm.xlu0 %1824, %v165_v39  }
  0x58   :  { %598 = vperm.xlu1 %1825, %v198_v40   ;;  %v2122_v40 = vadd.s32 56, %v1991_v3 }
  0x59   :  { %595 = vperm.xlu0 %1824, %v197_v41  }
  0x5c   :  { %556 = vperm.xlu1 %1825, %v184_v42  }
  0x5d   :  { %553 = vperm.xlu0 %1824, %v183_v43   ;;  %v2136_v43 = vadd.s32 64, %v1991_v3 }
  0x60   :  { %652 = vperm.xlu1 %1825, %v216_v44  }
  0x61   :  { %649 = vperm.xlu0 %1824, %v215_v45  }
  0x64   :  { %508 = vperm.xlu1 %1825, %v168_v46   ;;  %v2150_v46 = vadd.s32 72, %v1991_v3 }
  0x65   :  { %505 = vperm.xlu0 %1824, %v167_v47  }
  0x68   :  { %604 = vperm.xlu1 %1825, %v200_v48  }
  0x69   :  { %601 = vperm.xlu0 %1824, %v199_v49   ;;  %v2164_v49 = vadd.s32 80, %v1991_v3 }
  0x6c   :  { %562 = vperm.xlu1 %1825, %v186_v50  }
  0x6d   :  { %559 = vperm.xlu0 %1824, %v185_v51  }
  0x70   :  { %658 = vperm.xlu1 %1825, %v218_v52   ;;  %v2178_v52 = vadd.s32 88, %v1991_v3 }
  0x71   :  { %655 = vperm.xlu0 %1824, %v217_v53  }
  0x74   :  { %514 = vperm.xlu1 %1825, %v170_v54  }
  0x75   :  { %511 = vperm.xlu0 %1824, %v169_v55   ;;  %v2192_v55 = vadd.s32 96, %v1991_v3 }
  0x78   :  { %610 = vperm.xlu1 %1825, %v202_v56  }
  0x79   :  { %607 = vperm.xlu0 %1824, %v201_v57  }
  0x7c   :  { %568 = vperm.xlu1 %1825, %v188_v58   ;;  %v2206_v58 = vadd.s32 104, %v1991_v3 }
  0x7d   :  { %565 = vperm.xlu0 %1824, %v187_v59  }
  0x80   :  { %664 = vperm.xlu1 %1825, %v220_v60  }
  0x81   :  { %661 = vperm.xlu0 %1824, %v219_v61   ;;  %v2220_v61 = vadd.s32 112, %v1991_v3 }
  0x84   :  { %520 = vperm.xlu1 %1825, %v172_v62  }
  0x85   :  { %517 = vperm.xlu0 %1824, %v171_v63  }
  0x88   :  { %616 = vperm.xlu1 %1825, %v204_v1  }
  0x89   :  { %613 = vperm.xlu0 %1824, %v203_v2  }
  0x8b   :  { %v620_v15 = vpop.permute.xlu1 %619 }
  0x8c   :  { %v524_v16 = vpop.permute.xlu0 %523  ;;  %vm714_vm11 = vcmp.eq.s32.totalorder %v620_v15, %v2025_v20 }
  0x8d   :  { %vm682_vm8 = vcmp.eq.s32.totalorder %v524_v16, %v2025_v20 }
  0x8f   :  { %v623_v22 = vpop.permute.xlu1 %622 }
  0x90   :  { %v527_v23 = vpop.permute.xlu0 %526  ;;  %vm715_vm9 = vcmp.eq.s32.totalorder %v623_v22, %v2025_v20 }
  0x91   :  { %vm683_vm10 = vcmp.eq.s32.totalorder %v527_v23, %v2025_v20  ;;  %vm1785_vm13 = vmpackc.low %vm715_vm9, %vm714_vm11 }
  0x92   :  { %vm1753_vm12 = vmpackc.low %vm683_vm10, %vm682_vm8  ;;  %1786 = vmatprep.subr.msk.bf16.mxu1 %vm1785_vm13, %v1854_v25 }
  0x93   :  { %1754 = vmatprep.subr.msk.bf16.mxu0 %vm1753_vm12, %v1854_v25  ;;  %v479_v26 = vpop.permute.xlu1 %478 }
  0x94   :  { %v476_v27 = vpop.permute.xlu0 %475  ;;  %vm667_vm8 = vcmp.eq.s32.totalorder %v479_v26, %v2025_v20 }
  0x95   :  { %vm666_vm9 = vcmp.eq.s32.totalorder %v476_v27, %v2025_v20 }
  0x96   :  { %vm1755_vm10 = vmpackc.low %vm667_vm8, %vm666_vm9 }
  0x97   :  { %1756 = vmatpush3.bf16.msk.msra.mxu0 %vm1755_vm10, %v1854_v25  ;;  %v575_v29 = vpop.permute.xlu1 %574 }
  0x98   :  { %v572_v30 = vpop.permute.xlu0 %571  ;;  %vm699_vm8 = vcmp.eq.s32.totalorder %v575_v29, %v2025_v20 }
  0x99   :  { %vm698_vm9 = vcmp.eq.s32.totalorder %v572_v30, %v2025_v20 }
  0x9a   :  { %vm1787_vm0 = vmpackc.low %vm699_vm8, %vm698_vm9 }
  0x9b   :  { %1788 = vmatpush3.bf16.msk.msra.mxu1 %vm1787_vm0, %v1854_v25  ;;  %v533_v32 = vpop.permute.xlu1 %532 }
  0x9c   :  { %v530_v33 = vpop.permute.xlu0 %529  ;;  %vm685_vm8 = vcmp.eq.s32.totalorder %v533_v32, %v2025_v20 }
  0x9d   :  { %vm684_vm9 = vcmp.eq.s32.totalorder %v530_v33, %v2025_v20 }
  0x9e   :  { %vm1757_vm11 = vmpackc.low %vm685_vm8, %vm684_vm9 }
  0x9f   :  { %1758 = vmatprep.subr.msk.bf16.mxu0 %vm1757_vm11, %v1854_v25  ;;  %v629_v35 = vpop.permute.xlu1 %628 }
  0xa0   :  { %v626_v36 = vpop.permute.xlu0 %625  ;;  %vm717_vm8 = vcmp.eq.s32.totalorder %v629_v35, %v2025_v20 }
  0xa1   :  { %vm716_vm9 = vcmp.eq.s32.totalorder %v626_v36, %v2025_v20 }
  0xa2   :  { %vm1789_vm10 = vmpackc.low %vm717_vm8, %vm716_vm9 }
  0xa3   :  { %1790 = vmatprep.subr.msk.bf16.mxu1 %vm1789_vm10, %v1854_v25  ;;  %v485_v38 = vpop.permute.xlu1 %484 }
  0xa4   :  { %v482_v39 = vpop.permute.xlu0 %481  ;;  %vm669_vm8 = vcmp.eq.s32.totalorder %v485_v38, %v2025_v20 }
  0xa5   :  { %vm668_vm9 = vcmp.eq.s32.totalorder %v482_v39, %v2025_v20 }
  0xa6   :  { %vm1759_vm0 = vmpackc.low %vm669_vm8, %vm668_vm9 }
  0xa7   :  { %1760 = vmatpush3.bf16.msk.msra.mxu0 %vm1759_vm0, %v1854_v25  ;;  %v581_v41 = vpop.permute.xlu1 %580 }
  0xa8   :  { %v578_v42 = vpop.permute.xlu0 %577  ;;  %vm701_vm8 = vcmp.eq.s32.totalorder %v581_v41, %v2025_v20 }
  0xa9   :  { %vm700_vm9 = vcmp.eq.s32.totalorder %v578_v42, %v2025_v20 }
  0xaa   :  { %vm1791_vm11 = vmpackc.low %vm701_vm8, %vm700_vm9 }
  0xab   :  { %1792 = vmatpush3.bf16.msk.msra.mxu1 %vm1791_vm11, %v1854_v25  ;;  %v539_v44 = vpop.permute.xlu1 %538 }
  0xac   :  { %v536_v45 = vpop.permute.xlu0 %535  ;;  %vm687_vm8 = vcmp.eq.s32.totalorder %v539_v44, %v2025_v20 }
  0xad   :  { %vm686_vm9 = vcmp.eq.s32.totalorder %v536_v45, %v2025_v20 }
  0xae   :  { %vm1761_vm10 = vmpackc.low %vm687_vm8, %vm686_vm9 }
  0xaf   :  { %1762 = vmatprep.subr.msk.bf16.mxu0 %vm1761_vm10, %v1854_v25  ;;  %v635_v47 = vpop.permute.xlu1 %634 }
  0xb0   :  { %v632_v48 = vpop.permute.xlu0 %631  ;;  %vm719_vm8 = vcmp.eq.s32.totalorder %v635_v47, %v2025_v20 }
  0xb1   :  { %vm718_vm9 = vcmp.eq.s32.totalorder %v632_v48, %v2025_v20 }
  0xb2   :  { %vm1793_vm0 = vmpackc.low %vm719_vm8, %vm718_vm9 }
  0xb3   :  { %1794 = vmatprep.subr.msk.bf16.mxu1 %vm1793_vm0, %v1854_v25  ;;  %v491_v50 = vpop.permute.xlu1 %490 }
  0xb4   :  { %v488_v51 = vpop.permute.xlu0 %487  ;;  %vm671_vm8 = vcmp.eq.s32.totalorder %v491_v50, %v2025_v20 }
  0xb5   :  { %vm670_vm9 = vcmp.eq.s32.totalorder %v488_v51, %v2025_v20 }
  0xb6   :  { %vm1763_vm11 = vmpackc.low %vm671_vm8, %vm670_vm9 }
  0xb7   :  { %1764 = vmatpush3.bf16.msk.msra.mxu0 %vm1763_vm11, %v1854_v25  ;;  %v587_v53 = vpop.permute.xlu1 %586 }
  0xb8   :  { %v584_v54 = vpop.permute.xlu0 %583  ;;  %vm703_vm8 = vcmp.eq.s32.totalorder %v587_v53, %v2025_v20 }
  0xb9   :  { %vm702_vm9 = vcmp.eq.s32.totalorder %v584_v54, %v2025_v20 }
  0xba   :  { %vm1795_vm10 = vmpackc.low %vm703_vm8, %vm702_vm9 }
  0xbb   :  { %1796 = vmatpush3.bf16.msk.msra.mxu1 %vm1795_vm10, %v1854_v25  ;;  %v545_v56 = vpop.permute.xlu1 %544 }
  0xbc   :  { %v542_v57 = vpop.permute.xlu0 %541  ;;  %vm689_vm8 = vcmp.eq.s32.totalorder %v545_v56, %v2025_v20 }
  0xbd   :  { %vm688_vm9 = vcmp.eq.s32.totalorder %v542_v57, %v2025_v20 }
  0xbe   :  { %vm1765_vm0 = vmpackc.low %vm689_vm8, %vm688_vm9 }
  0xbf   :  { %1766 = vmatprep.subr.msk.bf16.mxu0 %vm1765_vm0, %v1854_v25  ;;  %v641_v59 = vpop.permute.xlu1 %640 }
  0xc0   :  { %v638_v60 = vpop.permute.xlu0 %637  ;;  %vm721_vm8 = vcmp.eq.s32.totalorder %v641_v59, %v2025_v20 }
  0xc1   :  { %vm720_vm9 = vcmp.eq.s32.totalorder %v638_v60, %v2025_v20 }
  0xc2   :  { %vm1797_vm11 = vmpackc.low %vm721_vm8, %vm720_vm9 }
  0xc3   :  { %1798 = vmatprep.subr.msk.bf16.mxu1 %vm1797_vm11, %v1854_v25  ;;  %v497_v62 = vpop.permute.xlu1 %496 }
  0xc4   :  { %v494_v63 = vpop.permute.xlu0 %493  ;;  %vm673_vm8 = vcmp.eq.s32.totalorder %v497_v62, %v2025_v20  ;;  %v860_v62 = vld [vmem:[#allocation2 + $0x10] sm:$0xff] }
  0xc5   :  { %vm672_vm9 = vcmp.eq.s32.totalorder %v494_v63, %v2025_v20 }
  0xc6   :  { %vm1767_vm10 = vmpackc.low %vm673_vm8, %vm672_vm9 }
  0xc7   :  { %1768 = vmatpush3.bf16.msk.msra.mxu0 %vm1767_vm10, %v1854_v25  ;;  %v593_v1 = vpop.permute.xlu1 %592 }
  0xc8   :  { %v590_v2 = vpop.permute.xlu0 %589  ;;  %vm705_vm8 = vcmp.eq.s32.totalorder %v593_v1, %v2025_v20 }
  0xc9   :  { %vm704_vm9 = vcmp.eq.s32.totalorder %v590_v2, %v2025_v20 }
  0xca   :  { %vm1799_vm0 = vmpackc.low %vm705_vm8, %vm704_vm9 }
  0xcb   :  { %1800 = vmatpush3.bf16.msk.msra.mxu1 %vm1799_vm0, %v1854_v25  ;;  %v551_v4 = vpop.permute.xlu1 %550 }
  0xcc   :  { %v548_v5 = vpop.permute.xlu0 %547  ;;  %vm691_vm10 = vcmp.eq.s32.totalorder %v551_v4, %v2025_v20 }
  0xcd   :  { %vm690_vm11 = vcmp.eq.s32.totalorder %v548_v5, %v2025_v20 }
  0xce   :  { %vm1769_vm12 = vmpackc.low %vm691_vm10, %vm690_vm11 }
  0xcf   :  { %1770 = vmatprep.subr.msk.bf16.mxu0 %vm1769_vm12, %v1854_v25  ;;  %v647_v6 = vpop.permute.xlu1 %646 }
  0xd0   :  { %v644_v7 = vpop.permute.xlu0 %643  ;;  %vm723_vm2 = vcmp.eq.s32.totalorder %v647_v6, %v2025_v20 }
  0xd1   :  { %vm722_vm13 = vcmp.eq.s32.totalorder %v644_v7, %v2025_v20 }
  0xd2   :  { %vm1801_vm15 = vmpackc.low %vm723_vm2, %vm722_vm13 }
  0xd3   :  { %1802 = vmatprep.subr.msk.bf16.mxu1 %vm1801_vm15, %v1854_v25  ;;  %v503_v8 = vpop.permute.xlu1 %502 }
  0xd4   :  { %v500_v10 = vpop.permute.xlu0 %499  ;;  %vm675_vm0 = vcmp.eq.s32.totalorder %v503_v8, %v2025_v20  ;;  %v861_v8 = vld [vmem:[#allocation2 + $0x18] sm:$0xff] }
  0xd5   :  { %vm674_vm8 = vcmp.eq.s32.totalorder %v500_v10, %v2025_v20 }
  0xd6   :  { %vm1771_vm9 = vmpackc.low %vm675_vm0, %vm674_vm8 }
  0xd7   :  { %1772 = vmatpush3.bf16.msk.msra.mxu0 %vm1771_vm9, %v1854_v25  ;;  %v599_v15 = vpop.permute.xlu1 %598 }
  0xd8   :  { %v596_v16 = vpop.permute.xlu0 %595  ;;  %vm707_vm12 = vcmp.eq.s32.totalorder %v599_v15, %v2025_v20 }
  0xd9   :  { %vm706_vm11 = vcmp.eq.s32.totalorder %v596_v16, %v2025_v20 }
  0xda   :  { %vm1803_vm10 = vmpackc.low %vm707_vm12, %vm706_vm11 }
  0xdb   :  { %1804 = vmatpush3.bf16.msk.msra.mxu1 %vm1803_vm10, %v1854_v25  ;;  %v557_v22 = vpop.permute.xlu1 %556 }
  0xdc   :  { %v554_v23 = vpop.permute.xlu0 %553  ;;  %vm693_vm15 = vcmp.eq.s32.totalorder %v557_v22, %v2025_v20 }
  0xdd   :  { %vm692_vm2 = vcmp.eq.s32.totalorder %v554_v23, %v2025_v20 }
  0xde   :  { %vm1773_vm13 = vmpackc.low %vm693_vm15, %vm692_vm2 }
  0xdf   :  { %1774 = vmatprep.subr.msk.bf16.mxu0 %vm1773_vm13, %v1854_v25  ;;  %v653_v26 = vpop.permute.xlu1 %652 }
  0xe0   :  { %v650_v27 = vpop.permute.xlu0 %649  ;;  %vm725_vm0 = vcmp.eq.s32.totalorder %v653_v26, %v2025_v20 }
  0xe1   :  { %vm724_vm8 = vcmp.eq.s32.totalorder %v650_v27, %v2025_v20 }
  0xe2   :  { %vm1805_vm9 = vmpackc.low %vm725_vm0, %vm724_vm8 }
  0xe3   :  { %1806 = vmatprep.subr.msk.bf16.mxu1 %vm1805_vm9, %v1854_v25  ;;  %v509_v29 = vpop.permute.xlu1 %508 }
  0xe4   :  { %v506_v30 = vpop.permute.xlu0 %505  ;;  %vm677_vm12 = vcmp.eq.s32.totalorder %v509_v29, %v2025_v20 }
  0xe5   :  { %vm676_vm11 = vcmp.eq.s32.totalorder %v506_v30, %v2025_v20  ;;  %v862_v30 = vld [vmem:[#allocation2 + $0x20] sm:$0xff] }
  0xe6   :  { %vm1775_vm10 = vmpackc.low %vm677_vm12, %vm676_vm11 }
  0xe7   :  { %1776 = vmatpush3.bf16.msk.msra.mxu0 %vm1775_vm10, %v1854_v25  ;;  %v605_v32 = vpop.permute.xlu1 %604 }
  0xe8   :  { %v602_v33 = vpop.permute.xlu0 %601  ;;  %vm709_vm15 = vcmp.eq.s32.totalorder %v605_v32, %v2025_v20 }
  0xe9   :  { %vm708_vm2 = vcmp.eq.s32.totalorder %v602_v33, %v2025_v20 }
  0xea   :  { %vm1807_vm13 = vmpackc.low %vm709_vm15, %vm708_vm2 }
  0xeb   :  { %1808 = vmatpush3.bf16.msk.msra.mxu1 %vm1807_vm13, %v1854_v25  ;;  %v563_v35 = vpop.permute.xlu1 %562 }
  0xec   :  { %v560_v36 = vpop.permute.xlu0 %559  ;;  %vm695_vm0 = vcmp.eq.s32.totalorder %v563_v35, %v2025_v20 }
  0xed   :  { %vm694_vm8 = vcmp.eq.s32.totalorder %v560_v36, %v2025_v20 }
  0xee   :  { %vm1777_vm9 = vmpackc.low %vm695_vm0, %vm694_vm8 }
  0xef   :  { %1778 = vmatprep.subr.msk.bf16.mxu0 %vm1777_vm9, %v1854_v25  ;;  %v659_v38 = vpop.permute.xlu1 %658 }
  0xf0   :  { %v656_v39 = vpop.permute.xlu0 %655  ;;  %vm727_vm12 = vcmp.eq.s32.totalorder %v659_v38, %v2025_v20 }
  0xf1   :  { %vm726_vm11 = vcmp.eq.s32.totalorder %v656_v39, %v2025_v20 }
  0xf2   :  { %vm1809_vm10 = vmpackc.low %vm727_vm12, %vm726_vm11 }
  0xf3   :  { %1810 = vmatprep.subr.msk.bf16.mxu1 %vm1809_vm10, %v1854_v25  ;;  %v515_v41 = vpop.permute.xlu1 %514 }
  0xf4   :  { %v512_v42 = vpop.permute.xlu0 %511  ;;  %vm679_vm15 = vcmp.eq.s32.totalorder %v515_v41, %v2025_v20 }
  0xf5   :  { %vm678_vm2 = vcmp.eq.s32.totalorder %v512_v42, %v2025_v20 }
  0xf6   :  { %vm1779_vm13 = vmpackc.low %vm679_vm15, %vm678_vm2 }
  0xf7   :  { %1780 = vmatpush3.bf16.msk.msra.mxu0 %vm1779_vm13, %v1854_v25  ;;  %v611_v44 = vpop.permute.xlu1 %610 }
  0xf8   :  { %v608_v45 = vpop.permute.xlu0 %607  ;;  %vm711_vm0 = vcmp.eq.s32.totalorder %v611_v44, %v2025_v20  ;;  %v863_v44 = vld [vmem:[#allocation2 + $0x28] sm:$0xff] }
  0xf9   :  { %vm710_vm8 = vcmp.eq.s32.totalorder %v608_v45, %v2025_v20 }
  0xfa   :  { %vm1811_vm9 = vmpackc.low %vm711_vm0, %vm710_vm8 }
  0xfb   :  { %1812 = vmatpush3.bf16.msk.msra.mxu1 %vm1811_vm9, %v1854_v25  ;;  %v569_v47 = vpop.permute.xlu1 %568 }
  0xfc   :  { %v566_v48 = vpop.permute.xlu0 %565  ;;  %vm697_vm12 = vcmp.eq.s32.totalorder %v569_v47, %v2025_v20 }
  0xfd   :  { %vm696_vm11 = vcmp.eq.s32.totalorder %v566_v48, %v2025_v20 }
  0xfe   :  { %vm1781_vm10 = vmpackc.low %vm697_vm12, %vm696_vm11 }
  0xff   :  { %1782 = vmatprep.subr.msk.bf16.mxu0 %vm1781_vm10, %v1854_v25  ;;  %v665_v50 = vpop.permute.xlu1 %664 }
 0x100   :  { %v662_v51 = vpop.permute.xlu0 %661  ;;  %vm729_vm15 = vcmp.eq.s32.totalorder %v665_v50, %v2025_v20 }
 0x101   :  { %vm728_vm2 = vcmp.eq.s32.totalorder %v662_v51, %v2025_v20 }
 0x102   :  { %vm1813_vm13 = vmpackc.low %vm729_vm15, %vm728_vm2  ;;  %vm2640_vm15 = vcmp.eq.s32.totalorder %v2066_v28, %v2021_v18  ;;  %vm2641_vm2 = vcmp.eq.s32.totalorder %v2080_v31, %v2011_v12 }
 0x103   :  { %1814 = vmatprep.subr.msk.bf16.mxu1 %vm1813_vm13, %v1854_v25  ;;  %v521_v53 = vpop.permute.xlu1 %520  ;;  %vm2642_vm13 = vcmp.eq.s32.totalorder %v2080_v31, %v2015_v14 }
 0x104   :  { %v518_v54 = vpop.permute.xlu0 %517  ;;  %vm681_vm0 = vcmp.eq.s32.totalorder %v521_v53, %v2025_v20 }
 0x105   :  { %vm680_vm8 = vcmp.eq.s32.totalorder %v518_v54, %v2025_v20 }
 0x106   :  { %vm1783_vm9 = vmpackc.low %vm681_vm0, %vm680_vm8  ;;  %vm2643_vm0 = vcmp.eq.s32.totalorder %v2094_v34, %v2006_v9  ;;  %vm2644_vm8 = vcmp.eq.s32.totalorder %v2080_v31, %v2021_v18 }
 0x107   :  { %1784 = vmatpush3.bf16.msk.msra.mxu0 %vm1783_vm9, %v1854_v25  ;;  %v617_v56 = vpop.permute.xlu1 %616  ;;  %vm2645_vm9 = vcmp.eq.s32.totalorder %v2094_v34, %v2011_v12 }
 0x108   :  { %v614_v57 = vpop.permute.xlu0 %613  ;;  %vm713_vm12 = vcmp.eq.s32.totalorder %v617_v56, %v2025_v20 }
 0x109   :  { %vm712_vm11 = vcmp.eq.s32.totalorder %v614_v57, %v2025_v20  ;;  %v864_v57 = vld [vmem:[#allocation2 + $0x30] sm:$0xff] }
 0x10a   :  { %vm1815_vm10 = vmpackc.low %vm713_vm12, %vm712_vm11  ;;  %1497 = vmatmul.mubr.msk.f32.vlgmr.msra.gmra.mrb[0].mxu0 %vm325_vm1, %v2013_v13  ;;  %vm2633_vm1 = vcmp.eq.s32.totalorder %v2051_v24, %v2011_v12  ;;  %vm2646_vm12 = vcmp.eq.s32.totalorder %v2094_v34, %v2015_v14  ;;  %vm2647_vm11 = vcmp.eq.s32.totalorder %v2108_v37, %v2006_v9 }
 0x10b   :  { %1816 = vmatpush3.bf16.msk.msra.mxu1 %vm1815_vm10, %v1854_v25  ;;  %1498 = vmatprep.mubr.msk.f32.mxu0 %vm330_vm4, %v2009_v11  ;;  %vm2635_vm4 = vcmp.eq.s32.totalorder %v2066_v28, %v2006_v9  ;;  %vm2648_vm10 = vcmp.eq.s32.totalorder %v2094_v34, %v2021_v18 }
 0x10e   :  { %1561 = vmatmul.mubr.msk.f32.vlgmr.msra.gmra.mrb[0].mxu1 %vm327_vm3, %v2023_v19  ;;  %1499 = vmatmul.mubr.msk.f32.gmra.mrb[2].mxu0 %vm329_vm5, %v2013_v13  ;;  %vm2634_vm3 = vcmp.eq.s32.totalorder %v2051_v24, %v2015_v14  ;;  %vm2636_vm5 = vcmp.eq.s32.totalorder %v2051_v24, %v2021_v18 }
 0x10f   :  { %1562 = vmatprep.mubr.msk.f32.mxu1 %vm332_vm6, %v2019_v17  ;;  %1500 = vmatprep.mubr.msk.f32.mxu0 %vm334_vm14, %v2009_v11  ;;  %vm2637_vm6 = vcmp.eq.s32.totalorder %v2066_v28, %v2011_v12  ;;  %vm2639_vm14 = vcmp.eq.s32.totalorder %v2080_v31, %v2006_v9 }
 0x112   :  { %1563 = vmatmul.mubr.msk.f32.gmra.mrb[2].mxu1 %vm331_vm7, %v2023_v19  ;;  %1501 = vmatmul.mubr.msk.f32.gmra.mrb[4].mxu0 %vm2633_vm1, %v2013_v13  ;;  %vm2638_vm7 = vcmp.eq.s32.totalorder %v2066_v28, %v2015_v14  ;;  %vm2649_vm1 = vcmp.eq.s32.totalorder %v2108_v37, %v2011_v12 }
 0x113   :  { %1564 = vmatprep.mubr.msk.f32.mxu1 %vm2634_vm3, %v2019_v17  ;;  %1502 = vmatprep.mubr.msk.f32.mxu0 %vm2635_vm4, %v2009_v11  ;;  %vm2650_vm3 = vcmp.eq.s32.totalorder %v2108_v37, %v2015_v14  ;;  %vm2651_vm4 = vcmp.eq.s32.totalorder %v2122_v40, %v2006_v9 }
 0x116   :  { %1565 = vmatmul.mubr.msk.f32.gmra.mrb[4].mxu1 %vm2636_vm5, %v2023_v19  ;;  %1503 = vmatmul.mubr.msk.f32.gmra.mrb[6].mxu0 %vm2637_vm6, %v2013_v13  ;;  %vm2652_vm5 = vcmp.eq.s32.totalorder %v2108_v37, %v2021_v18  ;;  %vm2653_vm6 = vcmp.eq.s32.totalorder %v2122_v40, %v2011_v12 }
 0x117   :  { %1566 = vmatprep.mubr.msk.f32.mxu1 %vm2638_vm7, %v2019_v17  ;;  %1504 = vmatprep.mubr.msk.f32.mxu0 %vm2639_vm14, %v2009_v11  ;;  %vm2654_vm7 = vcmp.eq.s32.totalorder %v2122_v40, %v2015_v14  ;;  %vm2655_vm14 = vcmp.eq.s32.totalorder %v2136_v43, %v2006_v9 }
 0x11a   :  { %1567 = vmatmul.mubr.msk.f32.gmra.mrb[6].mxu1 %vm2640_vm15, %v2023_v19  ;;  %1505 = vmatmul.mubr.msk.f32.gmra.mrb[8].mxu0 %vm2641_vm2, %v2013_v13  ;;  %vm2656_vm15 = vcmp.eq.s32.totalorder %v2122_v40, %v2021_v18  ;;  %vm2657_vm2 = vcmp.eq.s32.totalorder %v2136_v43, %v2011_v12 }
 0x11b   :  { %1568 = vmatprep.mubr.msk.f32.mxu1 %vm2642_vm13, %v2019_v17  ;;  %1506 = vmatprep.mubr.msk.f32.mxu0 %vm2643_vm0, %v2009_v11  ;;  %vm2658_vm13 = vcmp.eq.s32.totalorder %v2136_v43, %v2015_v14  ;;  %vm2659_vm0 = vcmp.eq.s32.totalorder %v2150_v46, %v2006_v9 }
 0x11e   :  { %1569 = vmatmul.mubr.msk.f32.gmra.mrb[8].mxu1 %vm2644_vm8, %v2023_v19  ;;  %1507 = vmatmul.mubr.msk.f32.gmra.mrb[10].mxu0 %vm2645_vm9, %v2013_v13  ;;  %vm2660_vm8 = vcmp.eq.s32.totalorder %v2136_v43, %v2021_v18  ;;  %vm2661_vm9 = vcmp.eq.s32.totalorder %v2150_v46, %v2011_v12 }
 0x11f   :  { %1570 = vmatprep.mubr.msk.f32.mxu1 %vm2646_vm12, %v2019_v17  ;;  %1508 = vmatprep.mubr.msk.f32.mxu0 %vm2647_vm11, %v2009_v11  ;;  %vm2662_vm12 = vcmp.eq.s32.totalorder %v2150_v46, %v2015_v14  ;;  %vm2663_vm11 = vcmp.eq.s32.totalorder %v2164_v49, %v2006_v9 }
 0x122   :  { %1571 = vmatmul.mubr.msk.f32.gmra.mrb[10].mxu1 %vm2648_vm10, %v2023_v19  ;;  %1509 = vmatmul.mubr.msk.f32.gmra.mrb[12].mxu0 %vm2649_vm1, %v2013_v13  ;;  %vm2664_vm10 = vcmp.eq.s32.totalorder %v2150_v46, %v2021_v18  ;;  %vm2665_vm1 = vcmp.eq.s32.totalorder %v2164_v49, %v2011_v12 }
 0x123   :  { %1572 = vmatprep.mubr.msk.f32.mxu1 %vm2650_vm3, %v2019_v17  ;;  %1510 = vmatprep.mubr.msk.f32.mxu0 %vm2651_vm4, %v2009_v11  ;;  %vm2666_vm3 = vcmp.eq.s32.totalorder %v2164_v49, %v2015_v14  ;;  %vm2667_vm4 = vcmp.eq.s32.totalorder %v2178_v52, %v2006_v9 }
 0x126   :  { %1573 = vmatmul.mubr.msk.f32.gmra.mrb[12].mxu1 %vm2652_vm5, %v2023_v19  ;;  %1511 = vmatmul.mubr.msk.f32.gmra.mrb[14].mxu0 %vm2653_vm6, %v2013_v13  ;;  %vm2668_vm5 = vcmp.eq.s32.totalorder %v2164_v49, %v2021_v18  ;;  %vm2669_vm6 = vcmp.eq.s32.totalorder %v2178_v52, %v2011_v12 }
 0x127   :  { %1574 = vmatprep.mubr.msk.f32.mxu1 %vm2654_vm7, %v2019_v17  ;;  %1512 = vmatprep.mubr.msk.f32.mxu0 %vm2655_vm14, %v2009_v11  ;;  %vm2670_vm7 = vcmp.eq.s32.totalorder %v2178_v52, %v2015_v14  ;;  %vm2671_vm14 = vcmp.eq.s32.totalorder %v2192_v55, %v2006_v9 }
 0x12a   :  { %1575 = vmatmul.mubr.msk.f32.gmra.mrb[14].mxu1 %vm2656_vm15, %v2023_v19  ;;  %1513 = vmatmul.mubr.msk.f32.gmra.mrb[16].mxu0 %vm2657_vm2, %v2013_v13  ;;  %vm2672_vm15 = vcmp.eq.s32.totalorder %v2178_v52, %v2021_v18  ;;  %vm2673_vm2 = vcmp.eq.s32.totalorder %v2192_v55, %v2011_v12 }
 0x12b   :  { %1576 = vmatprep.mubr.msk.f32.mxu1 %vm2658_vm13, %v2019_v17  ;;  %1514 = vmatprep.mubr.msk.f32.mxu0 %vm2659_vm0, %v2009_v11  ;;  %vm2674_vm13 = vcmp.eq.s32.totalorder %v2192_v55, %v2015_v14  ;;  %vm2675_vm0 = vcmp.eq.s32.totalorder %v2206_v58, %v2006_v9 }
 0x12e   :  { %1577 = vmatmul.mubr.msk.f32.gmra.mrb[16].mxu1 %vm2660_vm8, %v2023_v19  ;;  %1515 = vmatmul.mubr.msk.f32.gmra.mrb[18].mxu0 %vm2661_vm9, %v2013_v13  ;;  %vm2676_vm8 = vcmp.eq.s32.totalorder %v2192_v55, %v2021_v18  ;;  %vm2677_vm9 = vcmp.eq.s32.totalorder %v2206_v58, %v2011_v12 }
 0x12f   :  { %1578 = vmatprep.mubr.msk.f32.mxu1 %vm2662_vm12, %v2019_v17  ;;  %1516 = vmatprep.mubr.msk.f32.mxu0 %vm2663_vm11, %v2009_v11  ;;  %vm2678_vm12 = vcmp.eq.s32.totalorder %v2206_v58, %v2015_v14  ;;  %vm2679_vm11 = vcmp.eq.s32.totalorder %v2220_v61, %v2006_v9 }
 0x132   :  { %1579 = vmatmul.mubr.msk.f32.gmra.mrb[18].mxu1 %vm2664_vm10, %v2023_v19  ;;  %1517 = vmatmul.mubr.msk.f32.gmra.mrb[20].mxu0 %vm2665_vm1, %v2013_v13  ;;  %vm2680_vm10 = vcmp.eq.s32.totalorder %v2206_v58, %v2021_v18  ;;  %vm2681_vm1 = vcmp.eq.s32.totalorder %v2220_v61, %v2011_v12 }
 0x133   :  { %1580 = vmatprep.mubr.msk.f32.mxu1 %vm2666_vm3, %v2019_v17  ;;  %1518 = vmatprep.mubr.msk.f32.mxu0 %vm2667_vm4, %v2009_v11  ;;  %vm2682_vm3 = vcmp.eq.s32.totalorder %v2220_v61, %v2015_v14  ;;  %vm2683_vm4 = vcmp.eq.s32.totalorder %v2234_v0, %v2006_v9 }
 0x136   :  { %1581 = vmatmul.mubr.msk.f32.gmra.mrb[20].mxu1 %vm2668_vm5, %v2023_v19  ;;  %1519 = vmatmul.mubr.msk.f32.gmra.mrb[22].mxu0 %vm2669_vm6, %v2013_v13  ;;  %vm2684_vm5 = vcmp.eq.s32.totalorder %v2220_v61, %v2021_v18  ;;  %vm2685_vm6 = vcmp.eq.s32.totalorder %v2234_v0, %v2011_v12 }
 0x137   :  { %1582 = vmatprep.mubr.msk.f32.mxu1 %vm2670_vm7, %v2019_v17  ;;  %1520 = vmatprep.mubr.msk.f32.mxu0 %vm2671_vm14, %v2009_v11  ;;  %vm2686_vm7 = vcmp.eq.s32.totalorder %v2234_v0, %v2015_v14  ;;  %vm2687_vm14 = vcmp.eq.s32.totalorder %v2234_v0, %v2021_v18  ;;  %v859_v18 = vld [vmem:[#allocation2 + $0x8] sm:$0xff] }
 0x13a   :  { %1583 = vmatmul.mubr.msk.f32.gmra.mrb[22].mxu1 %vm2672_vm15, %v2023_v19  ;;  %1521 = vmatmul.mubr.msk.f32.gmra.mrb[24].mxu0 %vm2673_vm2, %v2013_v13 }
 0x13b   :  { %1584 = vmatprep.mubr.msk.f32.mxu1 %vm2674_vm13, %v2019_v17  ;;  %1522 = vmatprep.mubr.msk.f32.mxu0 %vm2675_vm0, %v2009_v11 }
 0x13e   :  { %1585 = vmatmul.mubr.msk.f32.gmra.mrb[24].mxu1 %vm2676_vm8, %v2023_v19  ;;  %1523 = vmatmul.mubr.msk.f32.gmra.mrb[26].mxu0 %vm2677_vm9, %v2013_v13 }
 0x13f   :  { %1586 = vmatprep.mubr.msk.f32.mxu1 %vm2678_vm12, %v2019_v17  ;;  %1524 = vmatprep.mubr.msk.f32.mxu0 %vm2679_vm11, %v2009_v11 }
 0x142   :  { %1587 = vmatmul.mubr.msk.f32.gmra.mrb[26].mxu1 %vm2680_vm10, %v2023_v19  ;;  %1525 = vmatmul.mubr.msk.f32.gmra.mrb[28].mxu0 %vm2681_vm1, %v2013_v13 }
 0x143   :  { %1588 = vmatprep.mubr.msk.f32.mxu1 %vm2682_vm3, %v2019_v17  ;;  %1526 = vmatprep.mubr.msk.f32.mxu0 %vm2683_vm4, %v2009_v11 }
 0x146   :  { %1589 = vmatmul.mubr.msk.f32.gmra.mrb[28].mxu1 %vm2684_vm5, %v2023_v19  ;;  %1527 = vmatmul.mubr.msk.f32.gmra.mrb[30].mxu0 %vm2685_vm6, %v2013_v13  ;;  %v858_v13 = vld [vmem:[#allocation2] sm:$0xff] }
 0x147   :  { %1590 = vmatprep.mubr.msk.f32.mxu1 %vm2686_vm7, %v2019_v17 }
 0x14a   :  { %1591 = vmatmul.mubr.msk.f32.gmra.mrb[30].mxu1 %vm2687_vm14, %v2023_v19 }
 0x1dd   :  { %v1625_v3 = vpop.f32.mrb[0].mxu0 }
 0x1de   :  { %v1626_v9 = vpop.f32.mrb[1].mxu0 }
 0x1df   :  { %v1627_v11 = vadd.f32 %v1626_v9, %v1625_v3 }
 0x1e1   :  { %v1705_v20 = vpop.f32.mrb[0].mxu1  ;;  %v1628_v21 = vpop.f32.mrb[2].mxu0 }
 0x1e2   :  { %v1706_v24 = vpop.f32.mrb[1].mxu1  ;;  %v1629_v25 = vpop.f32.mrb[3].mxu0 }
 0x1e3   :  { %v1707_v28 = vadd.f32 %v1706_v24, %v1705_v20  ;;  %v1630_v12 = vadd.f32 %v1629_v25, %v1628_v21 }
 0x1e5   :  { %v1086_v31 = vadd.f32 %v1707_v28, %v1627_v11  ;;  %v1708_v34 = vpop.f32.mrb[2].mxu1  ;;  %v1631_v37 = vpop.f32.mrb[4].mxu0 }
 0x1e6   :  { %v1709_v14 = vpop.f32.mrb[3].mxu1  ;;  %v1632_v17 = vpop.f32.mrb[5].mxu0 }
 0x1e7   :  { %v1164_v40 = vadd.f32 %v1086_v31, %v858_v13  ;;  %v1710_v43 = vadd.f32 %v1709_v14, %v1708_v34  ;;  %v1633_v46 = vadd.f32 %v1632_v17, %v1631_v37 }
 0x1e9   :  { %1180 = vst [vmem:[#allocation2] sm:$0xff] %v1164_v40  ;;  %v1091_v19 = vadd.f32 %v1710_v43, %v1630_v12  ;;  %v1711_v49 = vpop.f32.mrb[4].mxu1  ;;  %v1634_v52 = vpop.f32.mrb[6].mxu0  ;;  %v865_v12 = vld [vmem:[#allocation2 + $0x38] sm:$0xff] }
 0x1ea   :  { %v1712_v55 = vpop.f32.mrb[5].mxu1  ;;  %v1635_v58 = vpop.f32.mrb[7].mxu0 }
 0x1eb   :  { %v1165_v59 = vadd.f32 %v1091_v19, %v859_v18  ;;  %v1713_v60 = vadd.f32 %v1712_v55, %v1711_v49  ;;  %v1636_v61 = vadd.f32 %v1635_v58, %v1634_v52 }
 0x1ed   :  { %1181 = vst [vmem:[#allocation2 + $0x8] sm:$0xff] %v1165_v59  ;;  %v1096_v63 = vadd.f32 %v1713_v60, %v1633_v46  ;;  %v1714_v0 = vpop.f32.mrb[6].mxu1  ;;  %v1637_v1 = vpop.f32.mrb[8].mxu0  ;;  %v866_v46 = vld [vmem:[#allocation2 + $0x40] sm:$0xff] }
 0x1ee   :  { %v1715_v2 = vpop.f32.mrb[7].mxu1  ;;  %v1638_v4 = vpop.f32.mrb[9].mxu0 }
 0x1ef   :  { %v1166_v5 = vadd.f32 %v1096_v63, %v860_v62  ;;  %v1716_v6 = vadd.f32 %v1715_v2, %v1714_v0  ;;  %v1639_v7 = vadd.f32 %v1638_v4, %v1637_v1 }
 0x1f1   :  { %1182 = vst [vmem:[#allocation2 + $0x10] sm:$0xff] %v1166_v5  ;;  %v1101_v10 = vadd.f32 %v1716_v6, %v1636_v61  ;;  %v1717_v15 = vpop.f32.mrb[8].mxu1  ;;  %v1640_v16 = vpop.f32.mrb[10].mxu0  ;;  %v867_v61 = vld [vmem:[#allocation2 + $0x48] sm:$0xff] }
 0x1f2   :  { %v1718_v22 = vpop.f32.mrb[9].mxu1  ;;  %v1641_v23 = vpop.f32.mrb[11].mxu0 }
 0x1f3   :  { %v1167_v26 = vadd.f32 %v1101_v10, %v861_v8  ;;  %v1719_v27 = vadd.f32 %v1718_v22, %v1717_v15  ;;  %v1642_v29 = vadd.f32 %v1641_v23, %v1640_v16 }
 0x1f5   :  { %1183 = vst [vmem:[#allocation2 + $0x18] sm:$0xff] %v1167_v26  ;;  %v1106_v32 = vadd.f32 %v1719_v27, %v1639_v7  ;;  %v1720_v33 = vpop.f32.mrb[10].mxu1  ;;  %v1643_v35 = vpop.f32.mrb[12].mxu0  ;;  %v868_v7 = vld [vmem:[#allocation2 + $0x50] sm:$0xff] }
 0x1f6   :  { %v1721_v36 = vpop.f32.mrb[11].mxu1  ;;  %v1644_v38 = vpop.f32.mrb[13].mxu0 }
 0x1f7   :  { %v1168_v39 = vadd.f32 %v1106_v32, %v862_v30  ;;  %v1722_v41 = vadd.f32 %v1721_v36, %v1720_v33  ;;  %v1645_v42 = vadd.f32 %v1644_v38, %v1643_v35 }
 0x1f9   :  { %1184 = vst [vmem:[#allocation2 + $0x20] sm:$0xff] %v1168_v39  ;;  %v1111_v45 = vadd.f32 %v1722_v41, %v1642_v29  ;;  %v1723_v47 = vpop.f32.mrb[12].mxu1  ;;  %v1646_v48 = vpop.f32.mrb[14].mxu0  ;;  %v869_v29 = vld [vmem:[#allocation2 + $0x58] sm:$0xff] }
 0x1fa   :  { %v1724_v50 = vpop.f32.mrb[13].mxu1  ;;  %v1647_v51 = vpop.f32.mrb[15].mxu0 }
 0x1fb   :  { %v1169_v53 = vadd.f32 %v1111_v45, %v863_v44  ;;  %v1725_v54 = vadd.f32 %v1724_v50, %v1723_v47  ;;  %v1648_v56 = vadd.f32 %v1647_v51, %v1646_v48 }
 0x1fd   :  { %1185 = vst [vmem:[#allocation2 + $0x28] sm:$0xff] %v1169_v53  ;;  %v1116_v3 = vadd.f32 %v1725_v54, %v1645_v42  ;;  %v1726_v9 = vpop.f32.mrb[14].mxu1  ;;  %v1649_v11 = vpop.f32.mrb[16].mxu0  ;;  %v870_v42 = vld [vmem:[#allocation2 + $0x60] sm:$0xff] }
 0x1fe   :  { %v1727_v20 = vpop.f32.mrb[15].mxu1  ;;  %v1650_v21 = vpop.f32.mrb[17].mxu0 }
 0x1ff   :  { %v1170_v24 = vadd.f32 %v1116_v3, %v864_v57  ;;  %v1728_v25 = vadd.f32 %v1727_v20, %v1726_v9  ;;  %v1651_v28 = vadd.f32 %v1650_v21, %v1649_v11 }
 0x201   :  { %1186 = vst [vmem:[#allocation2 + $0x30] sm:$0xff] %v1170_v24  ;;  %v1121_v13 = vadd.f32 %v1728_v25, %v1648_v56  ;;  %v1729_v31 = vpop.f32.mrb[16].mxu1  ;;  %v1652_v34 = vpop.f32.mrb[18].mxu0  ;;  %v871_v56 = vld [vmem:[#allocation2 + $0x68] sm:$0xff] }
 0x202   :  { %v1730_v37 = vpop.f32.mrb[17].mxu1  ;;  %v1653_v14 = vpop.f32.mrb[19].mxu0 }
 0x203   :  { %v1171_v17 = vadd.f32 %v1121_v13, %v865_v12  ;;  %v1731_v40 = vadd.f32 %v1730_v37, %v1729_v31  ;;  %v1654_v43 = vadd.f32 %v1653_v14, %v1652_v34  ;;  %v873_v14 = vld [vmem:[#allocation2 + $0x78] sm:$0xff] }
 0x205   :  { %1187 = vst [vmem:[#allocation2 + $0x38] sm:$0xff] %v1171_v17  ;;  %v1126_v18 = vadd.f32 %v1731_v40, %v1651_v28  ;;  %v1732_v19 = vpop.f32.mrb[18].mxu1  ;;  %v1655_v49 = vpop.f32.mrb[20].mxu0  ;;  %v872_v28 = vld [vmem:[#allocation2 + $0x70] sm:$0xff] }
 0x206   :  { %v1733_v52 = vpop.f32.mrb[19].mxu1  ;;  %v1656_v55 = vpop.f32.mrb[21].mxu0 }
 0x207   :  { %v1172_v58 = vadd.f32 %v1126_v18, %v866_v46  ;;  %v1734_v59 = vadd.f32 %v1733_v52, %v1732_v19  ;;  %v1657_v60 = vadd.f32 %v1656_v55, %v1655_v49 }
 0x209   :  { %1188 = vst [vmem:[#allocation2 + $0x40] sm:$0xff] %v1172_v58  ;;  %v1131_v62 = vadd.f32 %v1734_v59, %v1654_v43  ;;  %v1735_v63 = vpop.f32.mrb[20].mxu1  ;;  %v1658_v0 = vpop.f32.mrb[22].mxu0 }
 0x20a   :  { %v1736_v1 = vpop.f32.mrb[21].mxu1  ;;  %v1659_v2 = vpop.f32.mrb[23].mxu0 }
 0x20b   :  { %v1173_v4 = vadd.f32 %v1131_v62, %v867_v61  ;;  %v1737_v5 = vadd.f32 %v1736_v1, %v1735_v63  ;;  %v1660_v6 = vadd.f32 %v1659_v2, %v1658_v0 }
 0x20d   :  { %1189 = vst [vmem:[#allocation2 + $0x48] sm:$0xff] %v1173_v4  ;;  %v1136_v8 = vadd.f32 %v1737_v5, %v1657_v60  ;;  %v1738_v10 = vpop.f32.mrb[22].mxu1  ;;  %v1661_v15 = vpop.f32.mrb[24].mxu0 }
 0x20e   :  { %v1739_v16 = vpop.f32.mrb[23].mxu1  ;;  %v1662_v22 = vpop.f32.mrb[25].mxu0 }
 0x20f   :  { %v1174_v23 = vadd.f32 %v1136_v8, %v868_v7  ;;  %v1740_v26 = vadd.f32 %v1739_v16, %v1738_v10  ;;  %v1663_v27 = vadd.f32 %v1662_v22, %v1661_v15 }
 0x211   :  { %1190 = vst [vmem:[#allocation2 + $0x50] sm:$0xff] %v1174_v23  ;;  %v1141_v30 = vadd.f32 %v1740_v26, %v1660_v6  ;;  %v1741_v32 = vpop.f32.mrb[24].mxu1  ;;  %v1664_v33 = vpop.f32.mrb[26].mxu0 }
 0x212   :  { %v1742_v35 = vpop.f32.mrb[25].mxu1  ;;  %v1665_v36 = vpop.f32.mrb[27].mxu0 }
 0x213   :  { %v1175_v38 = vadd.f32 %v1141_v30, %v869_v29  ;;  %v1743_v39 = vadd.f32 %v1742_v35, %v1741_v32  ;;  %v1666_v41 = vadd.f32 %v1665_v36, %v1664_v33 }
 0x215   :  { %1191 = vst [vmem:[#allocation2 + $0x58] sm:$0xff] %v1175_v38  ;;  %v1146_v44 = vadd.f32 %v1743_v39, %v1663_v27  ;;  %v1744_v45 = vpop.f32.mrb[26].mxu1  ;;  %v1667_v47 = vpop.f32.mrb[28].mxu0 }
 0x216   :  { %v1745_v48 = vpop.f32.mrb[27].mxu1  ;;  %v1668_v50 = vpop.f32.mrb[29].mxu0 }
 0x217   :  { %v1176_v51 = vadd.f32 %v1146_v44, %v870_v42  ;;  %v1746_v53 = vadd.f32 %v1745_v48, %v1744_v45  ;;  %v1669_v54 = vadd.f32 %v1668_v50, %v1667_v47 }
 0x219   :  { %1192 = vst [vmem:[#allocation2 + $0x60] sm:$0xff] %v1176_v51  ;;  %v1151_v57 = vadd.f32 %v1746_v53, %v1666_v41  ;;  %v1747_v3 = vpop.f32.mrb[28].mxu1  ;;  %v1670_v9 = vpop.f32.mrb[30].mxu0 }
 0x21a   :  { %v1748_v11 = vpop.f32.mrb[29].mxu1  ;;  %v1671_v20 = vpop.f32.mrb[31].mxu0 }
 0x21b   :  { %v1177_v21 = vadd.f32 %v1151_v57, %v871_v56  ;;  %v1749_v24 = vadd.f32 %v1748_v11, %v1747_v3  ;;  %v1672_v25 = vadd.f32 %v1671_v20, %v1670_v9 }
 0x21d   :  { %1193 = vst [vmem:[#allocation2 + $0x68] sm:$0xff] %v1177_v21  ;;  %v1156_v12 = vadd.f32 %v1749_v24, %v1669_v54  ;;  %v1750_v13 = vpop.f32.mrb[30].mxu1 }
 0x21e   :  { %v1751_v31 = vpop.f32.mrb[31].mxu1 }
 0x21f   :  { %v1178_v34 = vadd.f32 %v1156_v12, %v872_v28  ;;  %v1752_v37 = vadd.f32 %v1751_v31, %v1750_v13 }
 0x221   :  { %1194 = vst [vmem:[#allocation2 + $0x70] sm:$0xff] %v1178_v34  ;;  %v1161_v17 = vadd.f32 %v1752_v37, %v1672_v25 }
 0x223   :  { %v1179_v40 = vadd.f32 %v1161_v17, %v873_v14 }
 0x225   :  { %1195 = vst [vmem:[#allocation2 + $0x78] sm:$0xff] %v1179_v40 }
 0x226 PF:  { %v1201_v43 = vld [vmem:[%s2630_s5 + $0x10] sm:$0xff]  ;;  %v1199_v46 = vld [vmem:[%s2630_s5] sm:$0xff]  ;;  %v1855_v18 = vmov 0   ;;  %v1202_v19 = vld [vmem:[%s2630_s5 + $0x18] sm:$0xff] }
 0x227   :  { %1827 = vset.pattern.permute.xlu1 %v1855_v18  ;;  %1826 = vset.pattern.permute.xlu0 %v1855_v18  ;;  %v1200_v49 = vld [vmem:[%s2630_s5 + $0x8] sm:$0xff]  ;;  %v1203_v55 = vld [vmem:[%s2630_s5 + $0x20] sm:$0xff]  ;;  %v1206_v58 = vld [vmem:[%s2630_s5 + $0x38] sm:$0xff] }
 0x228   :  { %1243 = vperm.xlu1 %1827, %v1201_v43   ;;  %1233 = vperm.xlu0 %1826, %v1199_v46   ;;  %v1204_v52 = vld [vmem:[%s2630_s5 + $0x28] sm:$0xff]  ;;  %v1205_v59 = vld [vmem:[%s2630_s5 + $0x30] sm:$0xff]  ;;  %v1207_v61 = vld [vmem:[%s2630_s5 + $0x40] sm:$0xff] }
 0x229   :  { %v1208_v60 = vld [vmem:[%s2630_s5 + $0x48] sm:$0xff]  ;;  %v1210_v62 = vld [vmem:[%s2630_s5 + $0x58] sm:$0xff]  ;;  %v1209_v63 = vld [vmem:[%s2630_s5 + $0x50] sm:$0xff] }
 0x22a   :  { %v1212_v0 = vld [vmem:[%s2630_s5 + $0x68] sm:$0xff]  ;;  %v1211_v1 = vld [vmem:[%s2630_s5 + $0x60] sm:$0xff]  ;;  %v1214_v2 = vld [vmem:[%s2630_s5 + $0x78] sm:$0xff] }
 0x22b   :  { %v1213_v4 = vld [vmem:[%s2630_s5 + $0x70] sm:$0xff]  ;;  %v1215_v6 = vld [vmem:[#allocation2] sm:$0xff]  ;;  %v1218_v22 = vld [vmem:[#allocation2 + $0x18] sm:$0xff]  ;;  %s1856_s5 = smov [#allocation6]  }
 0x22c   :  { %1248 = vperm.xlu1 %1827, %v1202_v19   ;;  %1238 = vperm.xlu0 %1826, %v1200_v49   ;;  %v1217_v5 = vld [vmem:[#allocation2 + $0x10] sm:$0xff]  ;;  %v2595_v7 = vld [vmem:[%s2631_s6] ss:$0 sm:$0xff]  ;;  %v1216_v23 = vld [vmem:[#allocation2 + $0x8] sm:$0xff]  ;;  %s1371_s6 = sshll.u32 %s1856_s5, 4  ;;  %s1372_s6 = int_to_ptr.vmem [resolvable:$true] %s1371_s6 }
 0x22d   :  { %v1220_v35 = vld [vmem:[#allocation2 + $0x28] sm:$0xff]  ;;  %v1219_v36 = vld [vmem:[#allocation2 + $0x20] sm:$0xff]  ;;  %v1222_v47 = vld [vmem:[#allocation2 + $0x38] sm:$0xff]  ;;  %s1828_s26 = scalar_lea.vmem %s1372_s6, 2048  ;;  %p1833_p5 = scmp.lt.s32.totalorder %s1372_s6, %s1372_s6 }
 0x22e   :  { %v1221_v48 = vld [vmem:[#allocation2 + $0x30] sm:$0xff]  ;;  %v1224_v3 = vld [vmem:[#allocation2 + $0x48] sm:$0xff]  ;;  %v1223_v9 = vld [vmem:[#allocation2 + $0x40] sm:$0xff]  ;;  %p1829_p4 = scmp.ne.s32.totalorder %s1372_s6, %s1828_s26  ;;  %p1834_p6 = scmp.lt.s32.totalorder %s1828_s26, %s1828_s26 }
 0x22f   :  { %v1226_v12 = vld [vmem:[#allocation2 + $0x58] sm:$0xff]  ;;  %v1225_v13 = vld [vmem:[#allocation2 + $0x50] sm:$0xff]  ;;  %v1228_v43 = vld [vmem:[#allocation2 + $0x68] sm:$0xff] }
 0x230   :  { %1258 = vperm.xlu1 %1827, %v1204_v52   ;;  %1253 = vperm.xlu0 %1826, %v1203_v55   ;;  %v1227_v46 = vld [vmem:[#allocation2 + $0x60] sm:$0xff]  ;;  %p1835_p7 = por %p1834_p6, %p1833_p5 }
 0x232   :  { %p1836_p8 = pnand %p1835_p7, %p1829_p4 }
 0x234   :  { %1268 = vperm.xlu1 %1827, %v1206_v58   ;;  %1263 = vperm.xlu0 %1826, %v1205_v59   ;;  %v1230_v59 = vld [vmem:[#allocation2 + $0x78] sm:$0xff] }
 0x238   :  { %1278 = vperm.xlu1 %1827, %v1208_v60   ;;  %1273 = vperm.xlu0 %1826, %v1207_v61   ;;  %v1229_v60 = vld [vmem:[#allocation2 + $0x70] sm:$0xff] }
 0x23c   :  { %1288 = vperm.xlu1 %1827, %v1210_v62   ;;  %1283 = vperm.xlu0 %1826, %v1209_v63  }
 0x240   :  { %1298 = vperm.xlu1 %1827, %v1212_v0   ;;  %1293 = vperm.xlu0 %1826, %v1211_v1  }
 0x244   :  { %1308 = vperm.xlu1 %1827, %v1214_v2   ;;  %1303 = vperm.xlu0 %1826, %v1213_v4  }
 0x2a7   :  { %v1244_v8 = vpop.permute.xlu1 %1243  ;;  %v1234_v10 = vpop.permute.xlu0 %1233 }
 0x2a8   :  { %v1313_v15 = vmul.f32 %v1244_v8, %v1217_v5  ;;  %v1311_v16 = vmul.f32 %v1234_v10, %v1215_v6 }
 0x2aa   :  { %v1336_v26 = vmul.f32 %v2595_v7, %v1313_v15  ;;  %v1334_v27 = vmul.f32 %v2595_v7, %v1311_v16 }
 0x2ab   :  { %v1249_v29 = vpop.permute.xlu1 %1248  ;;  %v1239_v30 = vpop.permute.xlu0 %1238 }
 0x2ac   :  { %1352 = vst [vmem:[#allocation6 + $0x10] sm:$0xff] %v1336_v26  ;;  %1350 = vst [vmem:[#allocation6] sm:$0xff] %v1334_v27  ;;  %v1314_v32 = vmul.f32 %v1249_v29, %v1218_v22  ;;  %v1312_v33 = vmul.f32 %v1239_v30, %v1216_v23 }
 0x2ae   :  { %v1337_v38 = vmul.f32 %v2595_v7, %v1314_v32  ;;  %v1335_v39 = vmul.f32 %v2595_v7, %v1312_v33 }
 0x2af   :  { %v1259_v41 = vpop.permute.xlu1 %1258  ;;  %v1254_v42 = vpop.permute.xlu0 %1253 }
 0x2b0   :  { %1353 = vst [vmem:[#allocation6 + $0x18] sm:$0xff] %v1337_v38  ;;  %1351 = vst [vmem:[#allocation6 + $0x8] sm:$0xff] %v1335_v39  ;;  %v1316_v44 = vmul.f32 %v1259_v41, %v1220_v35  ;;  %v1315_v45 = vmul.f32 %v1254_v42, %v1219_v36 }
 0x2b2   :  { %v1339_v50 = vmul.f32 %v2595_v7, %v1316_v44  ;;  %v1338_v51 = vmul.f32 %v2595_v7, %v1315_v45 }
 0x2b3   :  { %v1269_v53 = vpop.permute.xlu1 %1268  ;;  %v1264_v54 = vpop.permute.xlu0 %1263 }
 0x2b4   :  { %1355 = vst [vmem:[#allocation6 + $0x28] sm:$0xff] %v1339_v50  ;;  %1354 = vst [vmem:[#allocation6 + $0x20] sm:$0xff] %v1338_v51  ;;  %v1318_v56 = vmul.f32 %v1269_v53, %v1222_v47  ;;  %v1317_v57 = vmul.f32 %v1264_v54, %v1221_v48 }
 0x2b6   :  { %v1341_v11 = vmul.f32 %v2595_v7, %v1318_v56  ;;  %v1340_v20 = vmul.f32 %v2595_v7, %v1317_v57 }
 0x2b7   :  { %v1279_v21 = vpop.permute.xlu1 %1278  ;;  %v1274_v24 = vpop.permute.xlu0 %1273 }
 0x2b8   :  { %1357 = vst [vmem:[#allocation6 + $0x38] sm:$0xff] %v1341_v11  ;;  %1356 = vst [vmem:[#allocation6 + $0x30] sm:$0xff] %v1340_v20  ;;  %v1320_v25 = vmul.f32 %v1279_v21, %v1224_v3  ;;  %v1319_v28 = vmul.f32 %v1274_v24, %v1223_v9 }
 0x2ba   :  { %v1343_v31 = vmul.f32 %v2595_v7, %v1320_v25  ;;  %v1342_v34 = vmul.f32 %v2595_v7, %v1319_v28 }
 0x2bb   :  { %v1289_v37 = vpop.permute.xlu1 %1288  ;;  %v1284_v14 = vpop.permute.xlu0 %1283 }
 0x2bc   :  { %1359 = vst [vmem:[#allocation6 + $0x48] sm:$0xff] %v1343_v31  ;;  %1358 = vst [vmem:[#allocation6 + $0x40] sm:$0xff] %v1342_v34  ;;  %v1322_v17 = vmul.f32 %v1289_v37, %v1226_v12  ;;  %v1321_v40 = vmul.f32 %v1284_v14, %v1225_v13 }
 0x2be   :  { %v1345_v18 = vmul.f32 %v2595_v7, %v1322_v17  ;;  %v1344_v19 = vmul.f32 %v2595_v7, %v1321_v40 }
 0x2bf   :  { %v1299_v49 = vpop.permute.xlu1 %1298  ;;  %v1294_v52 = vpop.permute.xlu0 %1293 }
 0x2c0   :  { %1361 = vst [vmem:[#allocation6 + $0x58] sm:$0xff] %v1345_v18  ;;  %1360 = vst [vmem:[#allocation6 + $0x50] sm:$0xff] %v1344_v19  ;;  %v1324_v55 = vmul.f32 %v1299_v49, %v1228_v43  ;;  %v1323_v58 = vmul.f32 %v1294_v52, %v1227_v46 }
 0x2c2   :  { %v1347_v61 = vmul.f32 %v2595_v7, %v1324_v55  ;;  %v1346_v62 = vmul.f32 %v2595_v7, %v1323_v58 }
 0x2c3   :  { %v1309_v63 = vpop.permute.xlu1 %1308  ;;  %v1304_v0 = vpop.permute.xlu0 %1303 }
 0x2c4   :  { %1363 = vst [vmem:[#allocation6 + $0x68] sm:$0xff] %v1347_v61  ;;  %1362 = vst [vmem:[#allocation6 + $0x60] sm:$0xff] %v1346_v62  ;;  %v1326_v1 = vmul.f32 %v1309_v63, %v1230_v59  ;;  %v1325_v2 = vmul.f32 %v1304_v0, %v1229_v60 }
 0x2c6   :  { %v1349_v4 = vmul.f32 %v2595_v7, %v1326_v1  ;;  %v1348_v5 = vmul.f32 %v2595_v7, %v1325_v2 }
 0x2c8   :  { %1365 = vst [vmem:[#allocation6 + $0x78] sm:$0xff] %v1349_v4  ;;  %1364 = vst [vmem:[#allocation6 + $0x70] sm:$0xff] %v1348_v5 }
 0x2c9   :  { %1839 = shalt.err (!%p1836_p8)
}
 0x2ca   :  { %s1840_s29 = scalar_lea.hbm %s2632_s7, 2048 }
 0x2cb   :  { %p1841_p9 = scmp.ne.s32.totalorder %s2632_s7, %s1840_s29  ;;  %p1844_p10 = scmp.lt.u32.totalorder %s1840_s29, %s2632_s7 }
 0x2cd   :  { %p1846_p11 = pnand %p1844_p10, %p1841_p9 }
 0x2cf   :  { %1849 = shalt.err (!%p1846_p11)
}
 0x2d0   :  { %s1857_s11 = smov 128   ;;  %s1858_s12 = smov 8  }
 0x2d1   :  { %1377 = dma.vmem_to_hbm [thread:$0]  %s1372_s6, 2048, %s2632_s7, [#allocation7], %s1857_s11, %s1857_s11, %s1858_s12  }
 0x2d2   :  { %1850 = dma.done.wait [#allocation7], 2048  }
 0x2d3   :  { %1851 = vsyncadd [#allocation7], 4294965248 }
 0x2d4   :  { %1381 = vsyncpa [#allocation7], 1 }

</bundles_post_ra>
